<compile_context>
chip_gen: v5e
topology: v5e:2x2
jax: 0.10.0
libtpu: 0.0.40
codegen_flags: <defaults>
</compile_context>

<pallas_src>
import functools

import jax
import jax.numpy as jnp
from jax.experimental import pallas as pl
from jax.experimental.pallas import tpu as pltpu


def _round_up(a: int, m: int) -> int:
    return (a + m - 1) // m * m


def _choose_tb(batch: int, block_b: int) -> int:
    """Batch tile: as large as possible (MXU fill + per-step overhead), capped
    at ~ceil(B/2) so the 1-D grid has >= 2 steps (keeps both v7x TCs busy)."""
    cap = max(8, _round_up(-(-batch // 2), 8))
    tb = min(block_b, 1024, cap)
    if tb >= 256:
        tb = (tb // 256) * 256          # align to 256-row MXU arrays (v6e/v7x)
    elif tb >= 16:
        tb = (tb // 16) * 16            # bf16 sublane packing
    else:
        tb = 8
    return tb


def pack_encoder_params(w1, b1, w2, b2, w3, b3):
    """One-time weight repack (hoisted out of the per-call forward path).

    * W1 -> bf16, b1 -> (1, 512) f32.
    * W2 || W3 fused into a single lane-aligned (512, Wc) bf16 slab with
      mu weights in cols [0, L) and log_sigma weights in cols [L, 2L);
      biases fused likewise (f32).
    """
    _, h1 = w1.shape
    latent = w2.shape[1]
    wc = max(128, _round_up(2 * latent, 128))
    w23 = jnp.zeros((h1, wc), jnp.float32)
    w23 = w23.at[:, :latent].set(w2).at[:, latent:2 * latent].set(w3)
    b23 = jnp.zeros((1, wc), jnp.float32)
    b23 = b23.at[0, :latent].set(b2).at[0, latent:2 * latent].set(b3)
    return (w1.astype(jnp.bfloat16),
            b1.reshape(1, h1).astype(jnp.float32),
            w23.astype(jnp.bfloat16),
            b23)


def _vae_encoder_kernel(x_ref, eps_ref, w1_ref, b1_ref, w23_ref, b23_ref,
                        z_ref, klp_ref, *, latent, batch):
    tb = x_ref.shape[0]
    l = latent

    # Layer 1 on the MXU: x arrives as f32 and is cast to bf16 here (no wrapper
    # copy pass over x); f32 accumulation, bias + ReLU on the VPU in f32.
    x_bf = x_ref[...].astype(jnp.bfloat16)
    h = jnp.dot(x_bf, w1_ref[...], preferred_element_type=jnp.float32)
    h = jnp.maximum(h + b1_ref[...], 0.0)

    # Fused layers 2 & 3: one (TB, 512) @ (512, Wc) matmul.
    # Columns [0, L) hold mu, [L, 2L) hold log_sigma.
    ml = jnp.dot(h.astype(jnp.bfloat16), w23_ref[...],
                 preferred_element_type=jnp.float32) + b23_ref[...]
    mu = ml[:, :l]
    log_sigma = ml[:, l:2 * l]
    sigma = jnp.exp(log_sigma)                       # EUP

    # Reparameterization. eps/z blocks are (TB, L): no lane padding anywhere.
    z_ref[...] = mu + sigma * eps_ref[...]

    # KL terms with log(exp(ls)) == ls (no second transcendental, no -inf when
    # exp underflows). Mask rows past the true batch size (padded last tile).
    row = jax.lax.broadcasted_iota(jnp.int32, (tb, l), 0) + pl.program_id(0) * tb
    kl_terms = jnp.where(row < batch,
                         sigma * sigma + mu * mu - log_sigma - 0.5, 0.0)

    # Per-tile partial sum via a single cross-sublane reduce (XLU), replacing
    # the previous serial sublane-add chain. Final reduction in the wrapper.
    klp_ref[0] = jnp.sum(kl_terms, axis=0, keepdims=True)


@functools.partial(jax.jit, static_argnames=("block_b",))
def variational_encoder_forward(x_nchw, packed_params, eps, *, block_b=512):
    """x_nchw: (B, C, H, W) with C*H*W == 784; eps: (B, L) ~ N(0,1).
    Returns (z of shape (B, L), kl scalar)."""
    w1, b1, w23, b23 = packed_params
    f_in, h1 = w1.shape
    wc = w23.shape[1]
    batch = x_nchw.shape[0]
    latent = eps.shape[1]
    assert 2 * latent <= wc

    x = x_nchw.reshape(batch, -1).astype(jnp.float32)   # free reshape, no cast copy
    assert x.shape[1] == f_in
    eps = eps.astype(jnp.float32)

    tb = _choose_tb(batch, block_b)
    b_pad = _round_up(batch, tb)
    grid = b_pad // tb
    if b_pad != batch:                                   # ragged-tail rows only
        x = jnp.pad(x, ((0, b_pad - batch), (0, 0)))
        eps = jnp.pad(eps, ((0, b_pad - batch), (0, 0)))

    flops = 2 * b_pad * f_in * h1 + 2 * b_pad * h1 * wc + 10 * b_pad * latent
    bytes_accessed = (b_pad * f_in * 4 + b_pad * latent * 4            # x, eps in
                      + w1.size * 2 + b1.size * 4
                      + w23.size * 2 + b23.size * 4                    # weights
                      + b_pad * latent * 4 + grid * latent * 4)        # z, kl out
    ce = pl.CostEstimate(flops=int(flops), transcendentals=int(b_pad * latent),
                         bytes_accessed=int(bytes_accessed))

    kernel = functools.partial(_vae_encoder_kernel, latent=latent, batch=batch)

    z_p, kl_parts = pl.pallas_call(
        kernel,
        out_shape=(
            jax.ShapeDtypeStruct((b_pad, latent), jnp.float32),
            jax.ShapeDtypeStruct((grid, 1, latent), jnp.float32),
        ),
        grid_spec=pltpu.PrefetchScalarGridSpec(
            num_scalar_prefetch=0,
            grid=(grid,),
            in_specs=[
                pl.BlockSpec((tb, f_in), lambda i: (i, 0)),     # x tile (f32, pipelined)
                pl.BlockSpec((tb, latent), lambda i: (i, 0)),   # eps tile (unpadded lanes)
                pl.BlockSpec((f_in, h1), lambda i: (0, 0)),     # W1 resident (bf16)
                pl.BlockSpec((1, h1), lambda i: (0, 0)),        # b1 resident
                pl.BlockSpec((h1, wc), lambda i: (0, 0)),       # fused W2||W3 resident
                pl.BlockSpec((1, wc), lambda i: (0, 0)),        # fused b2||b3 resident
            ],
            out_specs=[
                pl.BlockSpec((tb, latent), lambda i: (i, 0)),        # z tile
                pl.BlockSpec((1, 1, latent), lambda i: (i, 0, 0)),   # KL partials
            ],
        ),
        compiler_params=pltpu.CompilerParams(
            dimension_semantics=("parallel",)),
        cost_estimate=ce,
    )(x, eps, w1, b1, w23, b23)

    z = z_p[:batch]
    kl = jnp.sum(kl_parts)
    return z, kl


def _init_params(key, latent_dims):
    """Deterministic init mimicking nn.Linear's uniform(-1/sqrt(fan_in), +)."""
    ks = jax.random.split(key, 6)

    def lin(kw, kb, fan_in, fan_out):
        bound = 1.0 / jnp.sqrt(fan_in)
        # stored as (in, out) — transposed vs torch's (out, in)
        w = jax.random.uniform(kw, (fan_in, fan_out), jnp.float32, -bound, bound)
        b = jax.random.uniform(kb, (fan_out,), jnp.float32, -bound, bound)
        return w, b

    w1, b1 = lin(ks[0], ks[1], 784, 512)
    w2, b2 = lin(ks[2], ks[3], 512, latent_dims)
    w3, b3 = lin(ks[4], ks[5], 512, latent_dims)
    return w1, b1, w2, b2, w3, b3


def _reference(x_nchw, w1, b1, w2, b2, w3, b3, eps):
    """Module semantics with the same precision policy as the kernel
    (matmul operands rounded to bf16, accumulation/elementwise in f32)."""
    bf = lambda a: a.astype(jnp.bfloat16).astype(jnp.float32)
    x = bf(x_nchw.reshape(x_nchw.shape[0], -1).astype(jnp.float32))
    h = jax.nn.relu(jnp.dot(x, bf(w1), preferred_element_type=jnp.float32) + b1)
    hb = bf(h)
    mu = jnp.dot(hb, bf(w2), preferred_element_type=jnp.float32) + b2
    log_sigma = jnp.dot(hb, bf(w3), preferred_element_type=jnp.float32) + b3
    sigma = jnp.exp(log_sigma)
    z = mu + sigma * eps
    # log(sigma) == log(exp(log_sigma)) == log_sigma
    kl = jnp.sum(sigma ** 2 + mu ** 2 - log_sigma - 0.5)
    return z, kl


if __name__ == "__main__":
    key = jax.random.PRNGKey(0)
    k_params, k_x, k_eps = jax.random.split(key, 3)

    latent_dims = 16
    B = 32                                   # TB=16 -> grid of 2 tiles (v7x-friendly)
    x = jax.random.normal(k_x, (B, 1, 28, 28), jnp.float32)   # NCHW, 1*28*28 = 784

    w1, b1, w2, b2, w3, b3 = _init_params(k_params, latent_dims)
    packed = pack_encoder_params(w1, b1, w2, b2, w3, b3)       # one-time, hoisted

    # Reparameterization noise ~ N(0,1) (torch `self.N.sample`), sampled in JAX
    # so the kernel output is exactly verifiable against the reference.
    eps = jax.random.normal(k_eps, (B, latent_dims), jnp.float32)

    z, kl = variational_encoder_forward(x, packed, eps, block_b=512)
    z = jax.block_until_ready(z)
    kl = jax.block_until_ready(kl)

    z_ref, kl_ref = _reference(x, w1, b1, w2, b2, w3, b3, eps)
    assert z.shape == (B, latent_dims)
    assert jnp.allclose(z, z_ref, atol=2e-2, rtol=2e-2), "z mismatch"
    assert jnp.allclose(kl, kl_ref, atol=1e-1, rtol=1e-2), "kl mismatch"

    print("KERNEL_OK")
</pallas_src>

<mosaic_0001>
module attributes {stable_mosaic.version = 11 : i64} {
  func.func @_vae_encoder_kernel(%arg0: i32, %arg1: memref<16x784xf32, #tpu.memory_space<vmem>>, %arg2: memref<16x16xf32, #tpu.memory_space<vmem>>, %arg3: memref<784x512xbf16, #tpu.memory_space<vmem>>, %arg4: memref<1x512xf32, #tpu.memory_space<vmem>>, %arg5: memref<512x128xbf16, #tpu.memory_space<vmem>>, %arg6: memref<1x128xf32, #tpu.memory_space<vmem>>, %arg7: memref<16x16xf32, #tpu.memory_space<vmem>>, %arg8: memref<1x1x16xf32, #tpu.memory_space<vmem>>) attributes {dimension_semantics = [#tpu.dimension_semantics<parallel>], iteration_bounds = array<i64: 2>, scalar_prefetch = 0 : i64, scratch_operands = 0 : i64, tpu.core_type = #tpu.core_type<tc>, window_params = [{transform_indices = @transform_0, window_bounds = array<i64: 16, 784>}, {transform_indices = @transform_1, window_bounds = array<i64: 16, 16>}, {pipeline_mode = #tpu.pipeline_mode<synchronous>, transform_indices = @transform_2, window_bounds = array<i64: 784, 512>}, {pipeline_mode = #tpu.pipeline_mode<synchronous>, transform_indices = @transform_3, window_bounds = array<i64: 1, 512>}, {pipeline_mode = #tpu.pipeline_mode<synchronous>, transform_indices = @transform_4, window_bounds = array<i64: 512, 128>}, {pipeline_mode = #tpu.pipeline_mode<synchronous>, transform_indices = @transform_5, window_bounds = array<i64: 1, 128>}, {transform_indices = @transform_6, window_bounds = array<i64: 16, 16>}, {transform_indices = @transform_7, window_bounds = array<i64: 1, 1, 16>}]} {
    %c0 = arith.constant 0 : index
    %c0_0 = arith.constant 0 : index
    %0 = vector.load %arg1[%c0, %c0_0] : memref<16x784xf32, #tpu.memory_space<vmem>>, vector<16x784xf32>
    %1 = arith.truncf %0 : vector<16x784xf32> to vector<16x784xbf16>
    %c0_1 = arith.constant 0 : index
    %c0_2 = arith.constant 0 : index
    %2 = vector.load %arg3[%c0_1, %c0_2] : memref<784x512xbf16, #tpu.memory_space<vmem>>, vector<784x512xbf16>
    %cst = arith.constant dense<0.000000e+00> : vector<16x512xf32>
    %3 = tpu.matmul %1, %2, %cst {dimension_numbers = #tpu.dot_dimension_numbers<[1], [0], [0], [1], [0, 0, 1, 1], [], []>} : vector<16x784xbf16>, vector<784x512xbf16>, vector<16x512xf32> -> vector<16x512xf32>
    %c0_3 = arith.constant 0 : index
    %c0_4 = arith.constant 0 : index
    %4 = vector.load %arg4[%c0_3, %c0_4] : memref<1x512xf32, #tpu.memory_space<vmem>>, vector<1x512xf32>
    %5 = vector.broadcast %4 : vector<1x512xf32> to vector<16x512xf32>
    %6 = arith.addf %3, %5 : vector<16x512xf32>
    %cst_5 = arith.constant 0.000000e+00 : f32
    %7 = vector.broadcast %cst_5 : f32 to vector<16x512xf32>
    %8 = arith.maximumf %6, %7 : vector<16x512xf32>
    %9 = arith.truncf %8 : vector<16x512xf32> to vector<16x512xbf16>
    %c0_6 = arith.constant 0 : index
    %c0_7 = arith.constant 0 : index
    %10 = vector.load %arg5[%c0_6, %c0_7] : memref<512x128xbf16, #tpu.memory_space<vmem>>, vector<512x128xbf16>
    %cst_8 = arith.constant dense<0.000000e+00> : vector<16x128xf32>
    %11 = tpu.matmul %9, %10, %cst_8 {dimension_numbers = #tpu.dot_dimension_numbers<[1], [0], [0], [1], [0, 0, 1, 1], [], []>} : vector<16x512xbf16>, vector<512x128xbf16>, vector<16x128xf32> -> vector<16x128xf32>
    %c0_9 = arith.constant 0 : index
    %c0_10 = arith.constant 0 : index
    %12 = vector.load %arg6[%c0_9, %c0_10] : memref<1x128xf32, #tpu.memory_space<vmem>>, vector<1x128xf32>
    %13 = vector.broadcast %12 : vector<1x128xf32> to vector<16x128xf32>
    %14 = arith.addf %11, %13 : vector<16x128xf32>
    %15 = vector.extract_strided_slice %14 {offsets = [0, 0], sizes = [16, 16], strides = [1, 1]} : vector<16x128xf32> to vector<16x16xf32>
    %16 = vector.extract_strided_slice %14 {offsets = [0, 16], sizes = [16, 16], strides = [1, 1]} : vector<16x128xf32> to vector<16x16xf32>
    %17 = math.exp %16 : vector<16x16xf32>
    %c0_11 = arith.constant 0 : index
    %c0_12 = arith.constant 0 : index
    %18 = vector.load %arg2[%c0_11, %c0_12] : memref<16x16xf32, #tpu.memory_space<vmem>>, vector<16x16xf32>
    %19 = arith.mulf %17, %18 : vector<16x16xf32>
    %20 = arith.addf %15, %19 : vector<16x16xf32>
    %c0_13 = arith.constant 0 : index
    %c0_14 = arith.constant 0 : index
    %21 = vector.load %arg7[%c0_13, %c0_14] : memref<16x16xf32, #tpu.memory_space<vmem>>, vector<16x16xf32>
    tpu.vector_store %arg7[%c0_13, %c0_14], %20 {strides = array<i32>} : memref<16x16xf32, #tpu.memory_space<vmem>>, vector<16x16xf32>,
    %22 = tpu.iota {dimensions = array<i32: 0>} : vector<16x16xi32>
    %c16_i32 = arith.constant 16 : i32
    %23 = arith.muli %arg0, %c16_i32 : i32
    %24 = vector.broadcast %23 : i32 to vector<16x16xi32>
    %25 = arith.addi %22, %24 : vector<16x16xi32>
    %c32_i32 = arith.constant 32 : i32
    %26 = vector.broadcast %c32_i32 : i32 to vector<16x16xi32>
    %27 = arith.cmpi slt, %25, %26 : vector<16x16xi32>
    %28 = arith.mulf %17, %17 : vector<16x16xf32>
    %29 = arith.mulf %15, %15 : vector<16x16xf32>
    %30 = arith.addf %28, %29 : vector<16x16xf32>
    %31 = arith.subf %30, %16 : vector<16x16xf32>
    %cst_15 = arith.constant 5.000000e-01 : f32
    %32 = vector.broadcast %cst_15 : f32 to vector<16x16xf32>
    %33 = arith.subf %31, %32 : vector<16x16xf32>
    %cst_16 = arith.constant 0.000000e+00 : f32
    %34 = vector.broadcast %cst_16 : f32 to vector<16x16xf32>
    %35 = arith.select %27, %33, %34 : vector<16x16xi1>, vector<16x16xf32>
    %cst_17 = arith.constant dense<0.000000e+00> : vector<16xf32>
    %36 = vector.multi_reduction <add>, %35, %cst_17 [0] : vector<16x16xf32> to vector<16xf32>
    %37 = vector.shape_cast %36 : vector<16xf32> to vector<1x16xf32>
    %c0_18 = arith.constant 0 : index
    %c0_19 = arith.constant 0 : index
    %c0_20 = arith.constant 0 : index
    %38 = vector.load %arg8[%c0_18, %c0_19, %c0_20] : memref<1x1x16xf32, #tpu.memory_space<vmem>>, vector<1x1x16xf32>
    %39 = vector.shape_cast %38 : vector<1x1x16xf32> to vector<1x16xf32>
    %40 = vector.shape_cast %37 : vector<1x16xf32> to vector<1x1x16xf32>
    tpu.vector_store %arg8[%c0_18, %c0_19, %c0_20], %40 {strides = array<i32>} : memref<1x1x16xf32, #tpu.memory_space<vmem>>, vector<1x1x16xf32>,
    return
  }
  func.func @transform_0(%arg0: i32) -> (i32, i32) {
    %c0_i32 = arith.constant 0 : i32
    %c0_i32_0 = arith.constant 0 : i32
    return %arg0, %c0_i32 : i32, i32
  }
  func.func @transform_1(%arg0: i32) -> (i32, i32) {
    %c0_i32 = arith.constant 0 : i32
    %c0_i32_0 = arith.constant 0 : i32
    return %arg0, %c0_i32 : i32, i32
  }
  func.func @transform_2(%arg0: i32) -> (i32, i32) {
    %c0_i32 = arith.constant 0 : i32
    %c0_i32_0 = arith.constant 0 : i32
    %c0_i32_1 = arith.constant 0 : i32
    return %c0_i32, %c0_i32_0 : i32, i32
  }
  func.func @transform_3(%arg0: i32) -> (i32, i32) {
    %c0_i32 = arith.constant 0 : i32
    %c0_i32_0 = arith.constant 0 : i32
    %c0_i32_1 = arith.constant 0 : i32
    return %c0_i32, %c0_i32_0 : i32, i32
  }
  func.func @transform_4(%arg0: i32) -> (i32, i32) {
    %c0_i32 = arith.constant 0 : i32
    %c0_i32_0 = arith.constant 0 : i32
    %c0_i32_1 = arith.constant 0 : i32
    return %c0_i32, %c0_i32_0 : i32, i32
  }
  func.func @transform_5(%arg0: i32) -> (i32, i32) {
    %c0_i32 = arith.constant 0 : i32
    %c0_i32_0 = arith.constant 0 : i32
    %c0_i32_1 = arith.constant 0 : i32
    return %c0_i32, %c0_i32_0 : i32, i32
  }
  func.func @transform_6(%arg0: i32) -> (i32, i32) {
    %c0_i32 = arith.constant 0 : i32
    %c0_i32_0 = arith.constant 0 : i32
    return %arg0, %c0_i32 : i32, i32
  }
  func.func @transform_7(%arg0: i32) -> (i32, i32, i32) {
    %c0_i32 = arith.constant 0 : i32
    %c0_i32_0 = arith.constant 0 : i32
    %c0_i32_1 = arith.constant 0 : i32
    return %arg0, %c0_i32, %c0_i32_0 : i32, i32, i32
  }
}

</mosaic_0001>

<bundles_post_ra>
// kernel: variational_encoder_forward.1
= control target key start
LH: loop header
LB: loop body
LE: loop exit
PB: predicated region body
PF: predicated region fallthrough
CT: control target
= control target key end

     0   :  { %13 = vsyncpa [#allocation3], 0  ;;  %s3721_s24 = smov 0   ;;  %s3951_s0 = inlined_call_operand.vmem [shape: f32[32,784], index: 0, kind: input, shape index: {}]   ;;  %s3952_s1 = inlined_call_operand.vmem [shape: f32[32,16], index: 1, kind: input, shape index: {}]   ;;  %s3953_s2 = inlined_call_operand.hbm [shape: bf16[784,512], index: 2, kind: input, shape index: {}]   ;;  %s3954_s3 = inlined_call_operand.vmem [shape: f32[1,512], index: 3, kind: input, shape index: {}]   ;;  %s3955_s4 = inlined_call_operand.vmem [shape: bf16[512,128], index: 4, kind: input, shape index: {}]   ;;  %s3956_s5 = inlined_call_operand.vmem [shape: f32[1,128], index: 5, kind: input, shape index: {}]   ;;  %s3957_s6 = inlined_call_operand.vmem [shape: f32[32,16], index: 6, kind: output, shape index: {0}]   ;;  %s3958_s7 = inlined_call_operand.vmem [shape: f32[2,1,16], index: 7, kind: output, shape index: {1}]  }
   0x1 LB: > { %s223_s27 = sshll.u32 %s3953_s2, 4  ;;  %s3730_s28 = sadd.s32 4294967295, %s3674_s24   ;;  %s3674_s24 = sphi %s3721_s24, %s19_s24   ;;  %s224_s27 = int_to_ptr.hbm [resolvable:$true] %s223_s27 }
   0x2   : > { %p2445_p0 = scmp.ge.s32.totalorder %s3674_s24, 1  ;;  %p212_p1 = scmp.lt.s32.totalorder %s3674_s24, 3 }
   0x3   : > { %p3614_p2 = scmp.eq.s32.totalorder %s3730_s28, 0  ;;  %s3676_s29 = smov [#allocation2]  }
   0x4   : > { %p213_p3 = pnand %p2445_p0, %p212_p1  ;;  %s225_s30 = sshll.u32 %s3676_s29, 4  ;;  %s226_s30 = int_to_ptr.vmem [resolvable:$true] %s225_s30 }
   0x5   : > { %s3677_s8 = smov 256   ;;  %s3678_s9 = smov 16  }
   0x6   : > { %p3610_p4 = pneg %p213_p3  ;;  %269 = sbr.rel (%p213_p3) target bundleno = 757 (0x2f5), region = 44 }
   0x8   : > { %p3611_p5 = pnand %p3614_p2, %p3610_p4 }
   0xa   : > { %3613 = dma.hbm_to_vmem [thread:$0]  (!%p3611_p5), %s224_s27, 25088, %s226_s30, [#allocation3], %s3677_s8, %s3677_s8, %s3678_s9  }
   0xb   : > { %3669 = dma.done.wait (%p3614_p2), [#allocation3], 25088  }
   0xc   : > { %3671 = vsyncadd (%p3614_p2), [#allocation3], 4294942208  ;;  %s2450_s10 = sshll.u32 %s3730_s28, 1  ;;  %v2570_v0 = vld [vmem:[#allocation2 + $0xe0] sm:$0xf]  ;;  %vm1541_vm0 = vcmask 130048  }
   0xd   : > { %v3407_v1 = vld [vmem:[#allocation2 + $0xec] sm:$0xf0]  ;;  %v2698_v2 = vld [vmem:[#allocation2 + $0x1e0] sm:$0xf]  ;;  %p3738_p6 = scmp.lt.s32.totalorder %s2450_s10, 3  ;;  %s3679_s27 = smov 16  }
   0xe   : > { %v2571_v3 = vor.u32 %v3407_v1, %v2570_v0  ;;  %v3439_v4 = vld [vmem:[#allocation2 + $0x1ec] sm:$0xf0]  ;;  %v2826_v5 = vld [vmem:[#allocation2 + $0x2e0] sm:$0xf]  ;;  %s3680_s8 = smov 112   ;;  %s3372_s13 = sshll.u32 %s3730_s28, 4 }
   0xf   : > { %v3471_v6 = vld [vmem:[#allocation2 + $0x2ec] sm:$0xf0]  ;;  %v2699_v7 = vor.u32 %v3439_v4, %v2698_v2  ;;  %v2954_v9 = vld [vmem:[#allocation2 + $0x3e0] sm:$0xf]  ;;  %s3961_s10 = smov (!%p3738_p6, %s2450_s10), 3  ;;  %vm2322_vm3 = vcmask 261248  }
  0x10   : > { %v2827_v8 = vor.u32 %v3471_v6, %v2826_v5  ;;  %v3503_v10 = vld [vmem:[#allocation2 + $0x3ec] sm:$0xf0]  ;;  %v2554_v11 = vld [vmem:[#allocation2 + $0xc0] sm:$0xf]  ;;  %1545 = vmatpush.bf16.msra.mxu0 %v2571_v3  ;;  %s3605_s12 = smul.u32 56, %s3961_s10  ;;  %s2453_s22 = sshll.u32 %s3961_s10, 3 }
  0x11   : > { %v2955_v12 = vor.u32 %v3503_v10, %v2954_v9  ;;  %v3403_v13 = vld [vmem:[#allocation2 + $0xcc] sm:$0xf0]  ;;  %v2682_v14 = vld [vmem:[#allocation2 + $0x1c0] sm:$0xf]  ;;  %1559 = vmatpush.bf16.msra.mxu1 %v2699_v7  ;;  %s322_s26 = scalar_lea.vmem %s3952_s1, %s2453_s22  ;;  %p330_p7 = scmp.lt.s32.totalorder %s3730_s28, 1  ;;  %vm2336_vm4 = vcmask 122880  }
  0x12   : > { %v3435_v15 = vld [vmem:[#allocation2 + $0x1cc] sm:$0xf0]  ;;  %1573 = vmatpush.bf16.msra.mxu2 %v2827_v8  ;;  %v2555_v16 = vor.u32 %v3403_v13, %v2554_v11  ;;  %v2810_v18 = vld [vmem:[#allocation2 + $0x2c0] sm:$0xf]  ;;  %s3752_s15 = scalar_lea.vmem %s3951_s0, %s3605_s12  ;;  %s328_s12 = scalar_lea.vmem %s3957_s6, %s2453_s22 }
  0x13   : > { %v2683_v17 = vor.u32 %v3435_v15, %v2682_v14  ;;  %v3467_v19 = vld [vmem:[#allocation2 + $0x2cc] sm:$0xf0]  ;;  %v2938_v20 = vld [vmem:[#allocation2 + $0x3c0] sm:$0xf]  ;;  %1587 = vmatpush.bf16.msra.mxu3 %v2955_v12  ;;  %s3963_s28 = smov (!%p330_p7, %s3730_s28), 1 }
  0x14   : > { %v2811_v21 = vor.u32 %v3467_v19, %v2810_v18  ;;  %v3499_v22 = vld [vmem:[#allocation2 + $0x3cc] sm:$0xf0]  ;;  %v2538_v23 = vld [vmem:[#allocation2 + $0xa0] sm:$0xf]  ;;  %1546 = vmatpush.bf16.msra.mxu0 %v2555_v16 }
  0x15   : > { %v3399_v24 = vld [vmem:[#allocation2 + $0xac] sm:$0xf0]  ;;  %v2939_v25 = vor.u32 %v3499_v22, %v2938_v20  ;;  %v2666_v26 = vld [vmem:[#allocation2 + $0x1a0] sm:$0xf]  ;;  %1560 = vmatpush.bf16.msra.mxu1 %v2683_v17 }
  0x16   : > { %v3431_v27 = vld [vmem:[#allocation2 + $0x1ac] sm:$0xf0]  ;;  %v2794_v28 = vld [vmem:[#allocation2 + $0x2a0] sm:$0xf]  ;;  %v2539_v29 = vor.u32 %v3399_v24, %v2538_v23  ;;  %1574 = vmatpush.bf16.msra.mxu2 %v2811_v21 }
  0x17   : > { %v3463_v30 = vld [vmem:[#allocation2 + $0x2ac] sm:$0xf0]  ;;  %v2922_v31 = vld [vmem:[#allocation2 + $0x3a0] sm:$0xf]  ;;  %v2667_v33 = vor.u32 %v3431_v27, %v2666_v26  ;;  %1588 = vmatpush.bf16.msra.mxu3 %v2939_v25 }
  0x18   : > { %v3495_v32 = vld [vmem:[#allocation2 + $0x3ac] sm:$0xf0]  ;;  %v2795_v34 = vor.u32 %v3463_v30, %v2794_v28  ;;  %v2522_v35 = vld [vmem:[#allocation2 + $0x80] sm:$0xf]  ;;  %1547 = vmatpush.bf16.msra.mxu0 %v2539_v29 }
  0x19   : > { %v3395_v36 = vld [vmem:[#allocation2 + $0x8c] sm:$0xf0]  ;;  %v2650_v37 = vld [vmem:[#allocation2 + $0x180] sm:$0xf]  ;;  %v2923_v38 = vor.u32 %v3495_v32, %v2922_v31  ;;  %1561 = vmatpush.bf16.msra.mxu1 %v2667_v33  ;;  %v3405_v32 = vld [vmem:[#allocation2 + $0xe4] sm:$0xf] }
  0x1a   : > { %v3427_v39 = vld [vmem:[#allocation2 + $0x18c] sm:$0xf0]  ;;  %v2778_v40 = vld [vmem:[#allocation2 + $0x280] sm:$0xf]  ;;  %v2523_v44 = vor.u32 %v3395_v36, %v2522_v35  ;;  %1575 = vmatpush.bf16.msra.mxu2 %v2795_v34  ;;  %v2572_v33 = vld [vmem:[#allocation2 + $0xf0] sm:$0xf0] }
  0x1b   : > { %v3459_v41 = vld [vmem:[#allocation2 + $0x28c] sm:$0xf0]  ;;  %v2906_v42 = vld [vmem:[#allocation2 + $0x380] sm:$0xf]  ;;  %v2651_v45 = vor.u32 %v3427_v39, %v2650_v37  ;;  %1589 = vmatpush.bf16.msra.mxu3 %v2923_v38  ;;  %v343_v36 = vld [vmem:[%s3752_s15 + $0x48] sm:$0xff] }
  0x1c   : > { %v3491_v43 = vld [vmem:[#allocation2 + $0x38c] sm:$0xf0]  ;;  %v2779_v46 = vor.u32 %v3459_v41, %v2778_v40  ;;  %v2506_v47 = vld [vmem:[#allocation2 + $0x60] sm:$0xf]  ;;  %1548 = vmatpush.bf16.msra.mxu0 %v2523_v44  ;;  %v3437_v41 = vld [vmem:[#allocation2 + $0x1e4] sm:$0xf] }
  0x1d   : > { %v3391_v48 = vld [vmem:[#allocation2 + $0x6c] sm:$0xf0]  ;;  %v2634_v49 = vld [vmem:[#allocation2 + $0x160] sm:$0xf]  ;;  %v2907_v50 = vor.u32 %v3491_v43, %v2906_v42  ;;  %1562 = vmatpush.bf16.msra.mxu1 %v2651_v45  ;;  %v341_v43 = vld [vmem:[%s3752_s15 + $0x38] sm:$0xff] }
  0x1e   : > { %v3423_v51 = vld [vmem:[#allocation2 + $0x16c] sm:$0xf0]  ;;  %v2762_v52 = vld [vmem:[#allocation2 + $0x260] sm:$0xf]  ;;  %v2507_v56 = vor.u32 %v3391_v48, %v2506_v47  ;;  %1576 = vmatpush.bf16.msra.mxu2 %v2779_v46  ;;  %v2700_v46 = vld [vmem:[#allocation2 + $0x1f0] sm:$0xf0] }
  0x1f   : > { %v3455_v53 = vld [vmem:[#allocation2 + $0x26c] sm:$0xf0]  ;;  %v2890_v54 = vld [vmem:[#allocation2 + $0x360] sm:$0xf]  ;;  %v2635_v57 = vor.u32 %v3423_v51, %v2634_v49  ;;  %1590 = vmatpush.bf16.msra.mxu3 %v2907_v50  ;;  %v337_v47 = vld [vmem:[%s3752_s15 + $0x18] sm:$0xff]  ;;  %v2575_v50 = vor.u32 %v3405_v32, %v2572_v33 }
  0x20   : > { %v3487_v55 = vld [vmem:[#allocation2 + $0x36c] sm:$0xf0]  ;;  %v2763_v58 = vor.u32 %v3455_v53, %v2762_v52  ;;  %v2490_v59 = vld [vmem:[#allocation2 + $0x40] sm:$0xf]  ;;  %1549 = vmatpush.bf16.msra.mxu0 %v2507_v56 }
  0x21   : > { %v3387_v60 = vld [vmem:[#allocation2 + $0x4c] sm:$0xf0]  ;;  %v2618_v61 = vld [vmem:[#allocation2 + $0x140] sm:$0xf]  ;;  %v2891_v62 = vor.u32 %v3487_v55, %v2890_v54  ;;  %1563 = vmatpush.bf16.msra.mxu1 %v2635_v57  ;;  %v3401_v57 = vld [vmem:[#allocation2 + $0xc4] sm:$0xf] }
  0x22   : > { %v3419_v63 = vld [vmem:[#allocation2 + $0x14c] sm:$0xf0]  ;;  %v2746_v0 = vld [vmem:[#allocation2 + $0x240] sm:$0xf]  ;;  %v2491_v4 = vor.u32 %v3387_v60, %v2490_v59  ;;  %1577 = vmatpush.bf16.msra.mxu2 %v2763_v58  ;;  %v2556_v58 = vld [vmem:[#allocation2 + $0xd0] sm:$0xf0] }
  0x23   : > { %v3451_v1 = vld [vmem:[#allocation2 + $0x24c] sm:$0xf0]  ;;  %v2874_v2 = vld [vmem:[#allocation2 + $0x340] sm:$0xf]  ;;  %v2619_v6 = vor.u32 %v3419_v63, %v2618_v61  ;;  %1591 = vmatpush.bf16.msra.mxu3 %v2891_v62  ;;  %v335_v61 = vld [vmem:[%s3752_s15 + $0x8] sm:$0xff]  ;;  %v2703_v63 = vor.u32 %v3437_v41, %v2700_v46 }
  0x24   : > { %v3483_v3 = vld [vmem:[#allocation2 + $0x34c] sm:$0xf0]  ;;  %v2474_v5 = vld [vmem:[#allocation2 + $0x20] sm:$0xf]  ;;  %v2747_v7 = vor.u32 %v3451_v1, %v2746_v0  ;;  %1550 = vmatpush.bf16.msra.mxu0 %v2491_v4  ;;  %v3433_v1 = vld [vmem:[#allocation2 + $0x1c4] sm:$0xf]  ;;  %v2559_v4 = vor.u32 %v3401_v57, %v2556_v58 }
  0x25   : > { %v3383_v8 = vld [vmem:[#allocation2 + $0x2c] sm:$0xf0]  ;;  %v2602_v9 = vld [vmem:[#allocation2 + $0x120] sm:$0xf]  ;;  %v2875_v11 = vor.u32 %v3483_v3, %v2874_v2  ;;  %1564 = vmatpush.bf16.msra.mxu1 %v2619_v6  ;;  %v2684_v2 = vld [vmem:[#allocation2 + $0x1d0] sm:$0xf0] }
  0x26   : > { %v3415_v10 = vld [vmem:[#allocation2 + $0x12c] sm:$0xf0]  ;;  %v2730_v12 = vld [vmem:[#allocation2 + $0x220] sm:$0xf]  ;;  %v2475_v18 = vor.u32 %v3383_v8, %v2474_v5  ;;  %1578 = vmatpush.bf16.msra.mxu2 %v2747_v7  ;;  %v2636_v41 = vld [vmem:[#allocation2 + $0x170] sm:$0xf0] }
  0x27   : > { %v3447_v13 = vld [vmem:[#allocation2 + $0x22c] sm:$0xf0]  ;;  %v2858_v14 = vld [vmem:[#allocation2 + $0x320] sm:$0xf]  ;;  %v2603_v23 = vor.u32 %v3415_v10, %v2602_v9  ;;  %1592 = vmatpush.bf16.msra.mxu3 %v2875_v11  ;;  %v3397_v10 = vld [vmem:[#allocation2 + $0xa4] sm:$0xf] }
  0x28   : > { %v3479_v15 = vld [vmem:[#allocation2 + $0x32c] sm:$0xf0]  ;;  %v2458_v16 = vld [vmem:[#allocation2] sm:$0xf]  ;;  %v2731_v24 = vor.u32 %v3447_v13, %v2730_v12  ;;  %1551 = vmatpush.bf16.msra.mxu0 %v2475_v18  ;;  %v2540_v11 = vld [vmem:[#allocation2 + $0xb0] sm:$0xf0]  ;;  %v2687_v12 = vor.u32 %v3433_v1, %v2684_v2 }
  0x29   : > { %v3379_v17 = vld [vmem:[#allocation2 + $0xc] sm:$0xf0]  ;;  %v2586_v19 = vld [vmem:[#allocation2 + $0x100] sm:$0xf]  ;;  %v2859_v28 = vor.u32 %v3479_v15, %v2858_v14  ;;  %1565 = vmatpush.bf16.msra.mxu1 %v2603_v23  ;;  %v3429_v14 = vld [vmem:[#allocation2 + $0x1a4] sm:$0xf] }
  0x2a   : > { %v3411_v20 = vld [vmem:[#allocation2 + $0x10c] sm:$0xf0]  ;;  %v2714_v21 = vld [vmem:[#allocation2 + $0x200] sm:$0xf]  ;;  %v2459_v35 = vor.u32 %v3379_v17, %v2458_v16  ;;  %1579 = vmatpush.bf16.msra.mxu2 %v2731_v24  ;;  %v2668_v15 = vld [vmem:[#allocation2 + $0x1b0] sm:$0xf0]  ;;  %v2543_v17 = vor.u32 %v3397_v10, %v2540_v11 }
  0x2b   : > { %v3443_v22 = vld [vmem:[#allocation2 + $0x20c] sm:$0xf0]  ;;  %v2842_v25 = vld [vmem:[#allocation2 + $0x300] sm:$0xf]  ;;  %v2587_v39 = vor.u32 %v3411_v20, %v2586_v19  ;;  %1593 = vmatpush.bf16.msra.mxu3 %v2859_v28  ;;  %v2524_v23 = vld [vmem:[#allocation2 + $0x90] sm:$0xf0]  ;;  %v2671_v24 = vor.u32 %v3429_v14, %v2668_v15 }
  0x2c   : > { %v3475_v26 = vld [vmem:[#allocation2 + $0x30c] sm:$0xf0]  ;;  %v3082_v27 = vld [vmem:[#allocation2 + $0x4e0] sm:$0xf]  ;;  %v2715_v40 = vor.u32 %v3443_v22, %v2714_v21  ;;  %1552 = vmatpush.bf16.msra.mxu0 %v2459_v35  ;;  %v3393_v22 = vld [vmem:[#allocation2 + $0x84] sm:$0xf] }
  0x2d   : > { %v3535_v29 = vld [vmem:[#allocation2 + $0x4ec] sm:$0xf0]  ;;  %v3210_v30 = vld [vmem:[#allocation2 + $0x5e0] sm:$0xf]  ;;  %v2843_v44 = vor.u32 %v3475_v26, %v2842_v25  ;;  %1566 = vmatpush.bf16.msra.mxu1 %v2587_v39  ;;  %v3425_v26 = vld [vmem:[#allocation2 + $0x184] sm:$0xf] }
  0x2e   : > { %v3567_v31 = vld [vmem:[#allocation2 + $0x5ec] sm:$0xf0]  ;;  %v3226_v37 = vld [vmem:[#allocation2 + $0x600] sm:$0xf]  ;;  %v3083_v45 = vor.u32 %v3535_v29, %v3082_v27  ;;  %1580 = vmatpush.bf16.msra.mxu2 %v2715_v40  ;;  %v2652_v27 = vld [vmem:[#allocation2 + $0x190] sm:$0xf0]  ;;  %v2527_v29 = vor.u32 %v3393_v22, %v2524_v23 }
  0x2f   : > { %v336_v34 = vld [vmem:[%s3752_s15 + $0x10] sm:$0xff]  ;;  %v334_v42 = vld [vmem:[%s3752_s15] sm:$0xff]  ;;  %v3211_v49 = vor.u32 %v3567_v31, %v3210_v30  ;;  %1594 = vmatpush.bf16.msra.mxu3 %v2843_v44 }
  0x30   : > { %v3571_v38 = vld [vmem:[#allocation2 + $0x60c] sm:$0xf0]  ;;  %v3066_v51 = vld [vmem:[#allocation2 + $0x4c0] sm:$0xf]  ;;  %v3760_v54 = vpack.c.bf16 %v343_v36, %v336_v34  ;;  %v3762_v55 = vpack.c.bf16 %v341_v43, %v334_v42  ;;  %1601 = vmatpush.bf16.msrb.mxu0 %v3083_v45  ;;  %v3389_v34 = vld [vmem:[#allocation2 + $0x64] sm:$0xf] }
  0x31   : > { %v344_v48 = vld [vmem:[%s3752_s15 + $0x50] sm:$0xff]  ;;  %v3194_v53 = vld [vmem:[#allocation2 + $0x5c0] sm:$0xf]  ;;  %v3227_v59 = vor.u32 %v3571_v38, %v3226_v37  ;;  %1615 = vmatpush.bf16.msrb.mxu1 %v3211_v49  ;;  %v347_v37 = vld [vmem:[%s3752_s15 + $0x68] sm:$0xff]  ;;  %v2655_v38 = vor.u32 %v3425_v26, %v2652_v27 }
  0x32   : > { %v3531_v52 = vld [vmem:[#allocation2 + $0x4cc] sm:$0xf0]  ;;  %v3764_v60 = vpack.c.bf16 %v344_v48, %v337_v47  ;;  %v342_v62 = vld [vmem:[%s3752_s15 + $0x40] sm:$0xff]  ;;  %1581 = vmatmul.bf16.vlgmr.msra.gmra.mxu2 %v3760_v54  ;;  %1553 = vmatmul.bf16.vlgmr.msra.gmra.mxu0 %v3762_v55  ;;  %v2508_v35 = vld [vmem:[#allocation2 + $0x70] sm:$0xf0] }
  0x33   : > { %v3563_v56 = vld [vmem:[#allocation2 + $0x5cc] sm:$0xf0]  ;;  %v3067_v0 = vor.u32 %v3531_v52, %v3066_v51  ;;  %1643 = vmatpush.bf16.msrb.mxu3 %v2575_v50  ;;  %v3050_v5 = vld [vmem:[#allocation2 + $0x4a0] sm:$0xf]  ;;  %v3770_v8 = vpack.c.bf16 %v342_v62, %v335_v61  ;;  %1636 = vmatpush.bf16.msrb.mxu2 %v3227_v59  ;;  %v3421_v40 = vld [vmem:[#allocation2 + $0x164] sm:$0xf]  ;;  %v2511_v43 = vor.u32 %v3389_v34, %v2508_v35 }
  0x34   : > { %v3195_v3 = vor.u32 %v3563_v56, %v3194_v53  ;;  %v3527_v6 = vld [vmem:[#allocation2 + $0x4ac] sm:$0xf0]  ;;  %v3178_v7 = vld [vmem:[#allocation2 + $0x5a0] sm:$0xf]  ;;  %1595 = vmatmul.bf16.vlgmr.msra.gmra.mxu3 %v3764_v60  ;;  %v3385_v48 = vld [vmem:[#allocation2 + $0x44] sm:$0xf]  ;;  %v2639_v51 = vor.u32 %v3421_v40, %v2636_v41 }
  0x35   : > { %v3559_v9 = vld [vmem:[#allocation2 + $0x5ac] sm:$0xf0]  ;;  %1602 = vmatpush.bf16.msrb.mxu0 %v3067_v0  ;;  %v3051_v13 = vor.u32 %v3527_v6, %v3050_v5  ;;  %v3034_v18 = vld [vmem:[#allocation2 + $0x480] sm:$0xf]  ;;  %1567 = vmatmul.bf16.vlgmr.msra.gmra.mxu1 %v3770_v8  ;;  %v2492_v49 = vld [vmem:[#allocation2 + $0x50] sm:$0xf0] }
  0x36   : > { %1616 = vmatpush.bf16.msrb.mxu1 %v3195_v3  ;;  %v3179_v16 = vor.u32 %v3559_v9, %v3178_v7  ;;  %v3523_v19 = vld [vmem:[#allocation2 + $0x48c] sm:$0xf0]  ;;  %v3162_v20 = vld [vmem:[#allocation2 + $0x580] sm:$0xf]  ;;  %v3417_v53 = vld [vmem:[#allocation2 + $0x144] sm:$0xf]  ;;  %v2495_v58 = vor.u32 %v3385_v48, %v2492_v49 }
  0x37   : > { %1657 = vmatpush.bf16.msra.mxu2 %v2703_v63  ;;  %1644 = vmatpush.bf16.msrb.mxu3 %v2559_v4  ;;  %v3555_v21 = vld [vmem:[#allocation2 + $0x58c] sm:$0xf0]  ;;  %v3035_v25 = vor.u32 %v3523_v19, %v3034_v18  ;;  %v3018_v30 = vld [vmem:[#allocation2 + $0x460] sm:$0xf]  ;;  %v2620_v56 = vld [vmem:[#allocation2 + $0x150] sm:$0xf0] }
  0x38   : > { %v3163_v28 = vor.u32 %v3555_v21, %v3162_v20  ;;  %v3519_v31 = vld [vmem:[#allocation2 + $0x46c] sm:$0xf0]  ;;  %v3146_v32 = vld [vmem:[#allocation2 + $0x560] sm:$0xf]  ;;  %v3381_v0 = vld [vmem:[#allocation2 + $0x24] sm:$0xf]  ;;  %v2623_v4 = vor.u32 %v3417_v53, %v2620_v56 }
  0x39   : > { %1603 = vmatpush.bf16.msrb.mxu0 %v3051_v13  ;;  %v3551_v33 = vld [vmem:[#allocation2 + $0x56c] sm:$0xf0]  ;;  %v3019_v39 = vor.u32 %v3519_v31, %v3018_v30  ;;  %v3002_v44 = vld [vmem:[#allocation2 + $0x440] sm:$0xf]  ;;  %v2476_v1 = vld [vmem:[#allocation2 + $0x30] sm:$0xf0] }
  0x3a   : > { %1617 = vmatpush.bf16.msrb.mxu1 %v3179_v16  ;;  %v340_v36 = vld [vmem:[%s3752_s15 + $0x30] sm:$0xff]  ;;  %v3147_v42 = vor.u32 %v3551_v33, %v3146_v32  ;;  %v3130_v46 = vld [vmem:[#allocation2 + $0x540] sm:$0xf]  ;;  %v3413_v2 = vld [vmem:[#allocation2 + $0x124] sm:$0xf]  ;;  %v2479_v11 = vor.u32 %v3381_v0, %v2476_v1 }
  0x3b   : > { %1658 = vmatpush.bf16.msra.mxu2 %v2687_v12  ;;  %1645 = vmatpush.bf16.msrb.mxu3 %v2543_v17  ;;  %v3515_v45 = vld [vmem:[#allocation2 + $0x44c] sm:$0xf0]  ;;  %v3776_v50 = vpack.c.bf16 %v347_v37, %v340_v36  ;;  %v2986_v59 = vld [vmem:[#allocation2 + $0x420] sm:$0xf]  ;;  %v2604_v3 = vld [vmem:[#allocation2 + $0x130] sm:$0xf0] }
  0x3c   : > { %v3547_v47 = vld [vmem:[#allocation2 + $0x54c] sm:$0xf0]  ;;  %v3003_v52 = vor.u32 %v3515_v45, %v3002_v44  ;;  %v3114_v62 = vld [vmem:[#allocation2 + $0x520] sm:$0xf]  ;;  %v3377_v13 = vld [vmem:[#allocation2 + $0x4] sm:$0xf]  ;;  %v2607_v21 = vor.u32 %v3413_v2, %v2604_v3 }
  0x3d   : > { %1604 = vmatpush.bf16.msrb.mxu0 %v3035_v25  ;;  %v3131_v57 = vor.u32 %v3547_v47, %v3130_v46  ;;  %v3511_v61 = vld [vmem:[#allocation2 + $0x42c] sm:$0xf0]  ;;  %v2970_v6 = vld [vmem:[#allocation2 + $0x400] sm:$0xf]  ;;  %v2460_v14 = vld [vmem:[#allocation2 + $0x10] sm:$0xf0] }
  0x3e   : > { %1618 = vmatpush.bf16.msrb.mxu1 %v3163_v28  ;;  %v3543_v63 = vld [vmem:[#allocation2 + $0x52c] sm:$0xf0]  ;;  %v2987_v5 = vor.u32 %v3511_v61, %v2986_v59  ;;  %v3098_v9 = vld [vmem:[#allocation2 + $0x500] sm:$0xf]  ;;  %v3469_v15 = vld [vmem:[#allocation2 + $0x2e4] sm:$0xf]  ;;  %v2463_v27 = vor.u32 %v3377_v13, %v2460_v14 }
  0x3f   : > { %1659 = vmatpush.bf16.msra.mxu2 %v2671_v24  ;;  %1646 = vmatpush.bf16.msrb.mxu3 %v2527_v29  ;;  %v3507_v7 = vld [vmem:[#allocation2 + $0x40c] sm:$0xf0]  ;;  %v3115_v10 = vor.u32 %v3543_v63, %v3114_v62  ;;  %v2828_v16 = vld [vmem:[#allocation2 + $0x2f0] sm:$0xf0]  ;;  %v3501_v17 = vld [vmem:[#allocation2 + $0x3e4] sm:$0xf] }
  0x40   : > { %v3539_v12 = vld [vmem:[#allocation2 + $0x50c] sm:$0xf0]  ;;  %v2956_v18 = vld [vmem:[#allocation2 + $0x3f0] sm:$0xf0]  ;;  %v3533_v19 = vld [vmem:[#allocation2 + $0x4e4] sm:$0xf]  ;;  %v2971_v22 = vor.u32 %v3507_v7, %v2970_v6  ;;  %v2831_v31 = vor.u32 %v3469_v15, %v2828_v16 }
  0x41   : > { %1605 = vmatpush.bf16.msrb.mxu0 %v3019_v39  ;;  %v3084_v20 = vld [vmem:[#allocation2 + $0x4f0] sm:$0xf0]  ;;  %v338_v23 = vld [vmem:[%s3752_s15 + $0x20] sm:$0xff]  ;;  %v345_v24 = vld [vmem:[%s3752_s15 + $0x58] sm:$0xff]  ;;  %v3099_v26 = vor.u32 %v3539_v12, %v3098_v9  ;;  %v2959_v32 = vor.u32 %v3501_v17, %v2956_v18 }
  0x42   : > { %1619 = vmatpush.bf16.msrb.mxu1 %v3147_v42  ;;  %3240 = vmatmul.msk.bf16.vlgmr.msrb.gmra.mxu2 %vm1541_vm0, %v3776_v50  ;;  %v3409_v25 = vld [vmem:[#allocation2 + $0x104] sm:$0xf]  ;;  %v2588_v28 = vld [vmem:[#allocation2 + $0x110] sm:$0xf0]  ;;  %v339_v29 = vld [vmem:[%s3752_s15 + $0x28] sm:$0xff]  ;;  %v3087_v36 = vor.u32 %v3533_v19, %v3084_v20  ;;  %v3784_v37 = vpack.c.bf16 %v345_v24, %v338_v23 }
  0x43   : > { %1660 = vmatpush.bf16.msra.mxu2 %v2655_v38  ;;  %1647 = vmatpush.bf16.msrb.mxu3 %v2511_v43  ;;  %v346_v30 = vld [vmem:[%s3752_s15 + $0x60] sm:$0xff]  ;;  %v3212_v34 = vld [vmem:[#allocation2 + $0x5f0] sm:$0xf0]  ;;  %v2591_v41 = vor.u32 %v3409_v25, %v2588_v28  ;;  %s332_s15 = scalar_lea.vmem %s3958_s7, %s3963_s28 }
  0x44   : > { %v3565_v33 = vld [vmem:[#allocation2 + $0x5e4] sm:$0xf]  ;;  %v2812_v38 = vld [vmem:[#allocation2 + $0x2d0] sm:$0xf0]  ;;  %v3786_v42 = vpack.c.bf16 %v346_v30, %v339_v29 }
  0x45   : > { %1606 = vmatpush.bf16.msrb.mxu0 %v3003_v52  ;;  %v3465_v35 = vld [vmem:[#allocation2 + $0x2c4] sm:$0xf]  ;;  %v2940_v40 = vld [vmem:[#allocation2 + $0x3d0] sm:$0xf0]  ;;  %v3215_v45 = vor.u32 %v3565_v33, %v3212_v34 }
  0x46   : > { %1620 = vmatpush.bf16.msrb.mxu1 %v3131_v57  ;;  %v3497_v39 = vld [vmem:[#allocation2 + $0x3c4] sm:$0xf]  ;;  %v3068_v44 = vld [vmem:[#allocation2 + $0x4d0] sm:$0xf0]  ;;  %v2815_v46 = vor.u32 %v3465_v35, %v2812_v38 }
  0x47   : > { %1661 = vmatpush.bf16.msra.mxu2 %v2639_v51  ;;  %1648 = vmatpush.bf16.msrb.mxu3 %v2495_v58  ;;  %v3529_v43 = vld [vmem:[#allocation2 + $0x4c4] sm:$0xf]  ;;  %v2943_v47 = vor.u32 %v3497_v39, %v2940_v40  ;;  %v3196_v49 = vld [vmem:[#allocation2 + $0x5d0] sm:$0xf0] }
  0x48   : > { %v3561_v48 = vld [vmem:[#allocation2 + $0x5c4] sm:$0xf]  ;;  %v3071_v52 = vor.u32 %v3529_v43, %v3068_v44  ;;  %v2796_v53 = vld [vmem:[#allocation2 + $0x2b0] sm:$0xf0] }
  0x49   : > { %1607 = vmatpush.bf16.msrb.mxu0 %v2987_v5  ;;  %v3461_v51 = vld [vmem:[#allocation2 + $0x2a4] sm:$0xf]  ;;  %v2924_v57 = vld [vmem:[#allocation2 + $0x3b0] sm:$0xf0]  ;;  %v3199_v61 = vor.u32 %v3561_v48, %v3196_v49 }
  0x4a   : > { %1621 = vmatpush.bf16.msrb.mxu1 %v3115_v10  ;;  %v3493_v56 = vld [vmem:[#allocation2 + $0x3a4] sm:$0xf]  ;;  %v3052_v59 = vld [vmem:[#allocation2 + $0x4b0] sm:$0xf0]  ;;  %v2799_v62 = vor.u32 %v3461_v51, %v2796_v53 }
  0x4b   : > { %1662 = vmatpush.bf16.msra.mxu2 %v2623_v4  ;;  %1649 = vmatpush.bf16.msrb.mxu3 %v2479_v11  ;;  %v3525_v58 = vld [vmem:[#allocation2 + $0x4a4] sm:$0xf]  ;;  %v2927_v63 = vor.u32 %v3493_v56, %v2924_v57  ;;  %v3180_v1 = vld [vmem:[#allocation2 + $0x5b0] sm:$0xf0] }
  0x4c   : > { %v3557_v0 = vld [vmem:[#allocation2 + $0x5a4] sm:$0xf]  ;;  %v3055_v3 = vor.u32 %v3525_v58, %v3052_v59  ;;  %v2780_v4 = vld [vmem:[#allocation2 + $0x290] sm:$0xf0] }
  0x4d   : > { %1608 = vmatpush.bf16.msrb.mxu0 %v2971_v22  ;;  %v3457_v2 = vld [vmem:[#allocation2 + $0x284] sm:$0xf]  ;;  %v2908_v6 = vld [vmem:[#allocation2 + $0x390] sm:$0xf0]  ;;  %v3183_v10 = vor.u32 %v3557_v0, %v3180_v1  ;;  %v2578_v0 = vld [vmem:[#allocation2 + $0xe8] sm:$0xf] }
  0x4e   : > { %1622 = vmatpush.bf16.msrb.mxu1 %v3099_v26  ;;  %v3489_v5 = vld [vmem:[#allocation2 + $0x384] sm:$0xf]  ;;  %v3036_v9 = vld [vmem:[#allocation2 + $0x490] sm:$0xf0]  ;;  %v2783_v11 = vor.u32 %v3457_v2, %v2780_v4  ;;  %v3408_v1 = vld [vmem:[#allocation2 + $0xf4] sm:$0xf0] }
  0x4f   : > { %1663 = vmatpush.bf16.msra.mxu2 %v2607_v21  ;;  %1650 = vmatpush.bf16.msrb.mxu3 %v2463_v27  ;;  %v3521_v7 = vld [vmem:[#allocation2 + $0x484] sm:$0xf]  ;;  %v2911_v12 = vor.u32 %v3489_v5, %v2908_v6  ;;  %v3164_v14 = vld [vmem:[#allocation2 + $0x590] sm:$0xf0]  ;;  %v2834_v5 = vld [vmem:[#allocation2 + $0x2e8] sm:$0xf] }
  0x50   : > { %1609 = vmatmul.bf16.vlgmr.msrb.gmra.mxu0 %v3784_v37  ;;  %v3553_v13 = vld [vmem:[#allocation2 + $0x584] sm:$0xf]  ;;  %v3039_v16 = vor.u32 %v3521_v7, %v3036_v9  ;;  %v2764_v17 = vld [vmem:[#allocation2 + $0x270] sm:$0xf0]  ;;  %v3472_v6 = vld [vmem:[#allocation2 + $0x2f4] sm:$0xf0] }
  0x51   : > { %1671 = vmatpush.bf16.msra.mxu0 %v2831_v31  ;;  %1623 = vmatmul.bf16.vlgmr.msrb.gmra.mxu1 %v3786_v42  ;;  %v3453_v15 = vld [vmem:[#allocation2 + $0x264] sm:$0xf]  ;;  %v2892_v19 = vld [vmem:[#allocation2 + $0x370] sm:$0xf0]  ;;  %v3167_v22 = vor.u32 %v3553_v13, %v3164_v14  ;;  %v2579_v13 = vor.u32 %v3408_v1, %v2578_v0  ;;  %v2962_v14 = vld [vmem:[#allocation2 + $0x3e8] sm:$0xf] }
  0x52   : > { %1685 = vmatpush.bf16.msra.mxu1 %v2959_v32  ;;  %1651 = vmatmul.bf16.vlgmr.msrb.gmra.mxu3 %v3762_v55  ;;  %v3485_v18 = vld [vmem:[#allocation2 + $0x364] sm:$0xf]  ;;  %v3020_v21 = vld [vmem:[#allocation2 + $0x470] sm:$0xf0]  ;;  %v2767_v23 = vor.u32 %v3453_v15, %v2764_v17  ;;  %v3504_v15 = vld [vmem:[#allocation2 + $0x3f4] sm:$0xf0] }
  0x53   : > { %1699 = vmatpush.bf16.msra.mxu3 %v3087_v36  ;;  %1664 = vmatpush.bf16.msra.mxu2 %v2591_v41  ;;  %v3517_v20 = vld [vmem:[#allocation2 + $0x464] sm:$0xf]  ;;  %v2895_v24 = vor.u32 %v3485_v18, %v2892_v19  ;;  %v3148_v26 = vld [vmem:[#allocation2 + $0x570] sm:$0xf0]  ;;  %v2706_v17 = vld [vmem:[#allocation2 + $0x1e8] sm:$0xf]  ;;  %v2835_v19 = vor.u32 %v3472_v6, %v2834_v5 }
  0x54   : > { %v3549_v25 = vld [vmem:[#allocation2 + $0x564] sm:$0xf]  ;;  %v3023_v28 = vor.u32 %v3517_v20, %v3020_v21  ;;  %v2748_v29 = vld [vmem:[#allocation2 + $0x250] sm:$0xf0]  ;;  %v3440_v18 = vld [vmem:[#allocation2 + $0x1f4] sm:$0xf0] }
  0x55   : > { %1672 = vmatpush.bf16.msra.mxu0 %v2815_v46  ;;  %v3449_v27 = vld [vmem:[#allocation2 + $0x244] sm:$0xf]  ;;  %v2876_v31 = vld [vmem:[#allocation2 + $0x350] sm:$0xf0]  ;;  %v3151_v34 = vor.u32 %v3549_v25, %v3148_v26  ;;  %v2562_v21 = vld [vmem:[#allocation2 + $0xc8] sm:$0xf]  ;;  %v2707_v26 = vor.u32 %v3440_v18, %v2706_v17 }
  0x56   : > { %1686 = vmatpush.bf16.msra.mxu1 %v2943_v47  ;;  %1665 = vmatmul.bf16.vlgmr.msra.gmra.mxu2 %v3770_v8  ;;  %v3481_v30 = vld [vmem:[#allocation2 + $0x344] sm:$0xf]  ;;  %v3004_v33 = vld [vmem:[#allocation2 + $0x450] sm:$0xf0]  ;;  %v2751_v35 = vor.u32 %v3449_v27, %v2748_v29  ;;  %v3468_v25 = vld [vmem:[#allocation2 + $0x2d4] sm:$0xf0] }
  0x57   : > { %1713 = vmatpush.bf16.msrb.mxu2 %v3215_v45  ;;  %1700 = vmatpush.bf16.msra.mxu3 %v3071_v52  ;;  %v3513_v32 = vld [vmem:[#allocation2 + $0x444] sm:$0xf]  ;;  %v2879_v36 = vor.u32 %v3481_v30, %v2876_v31  ;;  %v3132_v39 = vld [vmem:[#allocation2 + $0x550] sm:$0xf0]  ;;  %v2946_v27 = vld [vmem:[#allocation2 + $0x3c8] sm:$0xf] }
  0x58   : > { %v3545_v38 = vld [vmem:[#allocation2 + $0x544] sm:$0xf]  ;;  %v3007_v41 = vor.u32 %v3513_v32, %v3004_v33  ;;  %v2732_v43 = vld [vmem:[#allocation2 + $0x230] sm:$0xf0]  ;;  %v2690_v30 = vld [vmem:[#allocation2 + $0x1c8] sm:$0xf] }
  0x59   : > { %1673 = vmatpush.bf16.msra.mxu0 %v2799_v62  ;;  %v3445_v40 = vld [vmem:[#allocation2 + $0x224] sm:$0xf]  ;;  %v2860_v45 = vld [vmem:[#allocation2 + $0x330] sm:$0xf0]  ;;  %v3135_v48 = vor.u32 %v3545_v38, %v3132_v39  ;;  %v3436_v31 = vld [vmem:[#allocation2 + $0x1d4] sm:$0xf0] }
  0x5a   : > { %1687 = vmatpush.bf16.msra.mxu1 %v2927_v63  ;;  %v3477_v44 = vld [vmem:[#allocation2 + $0x324] sm:$0xf]  ;;  %v2988_v47 = vld [vmem:[#allocation2 + $0x430] sm:$0xf0]  ;;  %v2735_v52 = vor.u32 %v3445_v40, %v2732_v43  ;;  %v2546_v33 = vld [vmem:[#allocation2 + $0xa8] sm:$0xf]  ;;  %v2691_v39 = vor.u32 %v3436_v31, %v2690_v30 }
  0x5b   : > { %1714 = vmatpush.bf16.msrb.mxu2 %v3199_v61  ;;  %1701 = vmatpush.bf16.msra.mxu3 %v3055_v3  ;;  %v3509_v46 = vld [vmem:[#allocation2 + $0x424] sm:$0xf]  ;;  %v3116_v51 = vld [vmem:[#allocation2 + $0x530] sm:$0xf0]  ;;  %v2863_v53 = vor.u32 %v3477_v44, %v2860_v45  ;;  %v3464_v38 = vld [vmem:[#allocation2 + $0x2b4] sm:$0xf0] }
  0x5c   : > { %v3541_v49 = vld [vmem:[#allocation2 + $0x524] sm:$0xf]  ;;  %v2716_v57 = vld [vmem:[#allocation2 + $0x210] sm:$0xf0]  ;;  %v2991_v59 = vor.u32 %v3509_v46, %v2988_v47  ;;  %v2930_v40 = vld [vmem:[#allocation2 + $0x3a8] sm:$0xf] }
  0x5d   : > { %1674 = vmatpush.bf16.msra.mxu0 %v2783_v11  ;;  %v3441_v56 = vld [vmem:[#allocation2 + $0x204] sm:$0xf]  ;;  %v2844_v61 = vld [vmem:[#allocation2 + $0x310] sm:$0xf0]  ;;  %v3119_v3 = vor.u32 %v3541_v49, %v3116_v51  ;;  %v2674_v44 = vld [vmem:[#allocation2 + $0x1a8] sm:$0xf] }
  0x5e   : > { %1688 = vmatpush.bf16.msra.mxu1 %v2911_v12  ;;  %v3473_v58 = vld [vmem:[#allocation2 + $0x304] sm:$0xf]  ;;  %v2972_v63 = vld [vmem:[#allocation2 + $0x410] sm:$0xf0]  ;;  %v2719_v7 = vor.u32 %v3441_v56, %v2716_v57  ;;  %v3432_v45 = vld [vmem:[#allocation2 + $0x1b4] sm:$0xf0] }
  0x5f   : > { %1715 = vmatpush.bf16.msrb.mxu2 %v3183_v10  ;;  %1702 = vmatpush.bf16.msra.mxu3 %v3039_v16  ;;  %v3505_v62 = vld [vmem:[#allocation2 + $0x404] sm:$0xf]  ;;  %v3228_v4 = vld [vmem:[#allocation2 + $0x610] sm:$0xf0]  ;;  %v2847_v9 = vor.u32 %v3473_v58, %v2844_v61  ;;  %v2530_v47 = vld [vmem:[#allocation2 + $0x88] sm:$0xf] }
  0x60   : > { %v3569_v2 = vld [vmem:[#allocation2 + $0x604] sm:$0xf]  ;;  %v3100_v11 = vld [vmem:[#allocation2 + $0x510] sm:$0xf0]  ;;  %v2975_v12 = vor.u32 %v3505_v62, %v2972_v63  ;;  %v2786_v51 = vld [vmem:[#allocation2 + $0x288] sm:$0xf] }
  0x61   : > { %1675 = vmatpush.bf16.msra.mxu0 %v2767_v23  ;;  %v3537_v10 = vld [vmem:[#allocation2 + $0x504] sm:$0xf]  ;;  %v3231_v16 = vor.u32 %v3569_v2, %v3228_v4  ;;  %v2963_v23 = vor.u32 %v3504_v15, %v2962_v14  ;;  %v2914_v56 = vld [vmem:[#allocation2 + $0x388] sm:$0xf]  ;;  %v3492_v57 = vld [vmem:[#allocation2 + $0x394] sm:$0xf0] }
  0x62   : > { %1689 = vmatpush.bf16.msra.mxu1 %v2895_v24  ;;  %v3103_v20 = vor.u32 %v3537_v10, %v3100_v11  ;;  %v2818_v24 = vld [vmem:[#allocation2 + $0x2c8] sm:$0xf]  ;;  %v3428_v61 = vld [vmem:[#allocation2 + $0x194] sm:$0xf0]  ;;  %v2915_v1 = vor.u32 %v3492_v57, %v2914_v56  ;;  %v3406_v56 = vld [vmem:[#allocation2 + $0xec] sm:$0xf] }
  0x63   : > { %1716 = vmatpush.bf16.msrb.mxu2 %v3167_v22  ;;  %1703 = vmatpush.bf16.msra.mxu3 %v3023_v28  ;;  %v3404_v22 = vld [vmem:[#allocation2 + $0xd4] sm:$0xf0]  ;;  %v2819_v32 = vor.u32 %v3468_v25, %v2818_v24  ;;  %v2514_v63 = vld [vmem:[#allocation2 + $0x68] sm:$0xf]  ;;  %v2580_v57 = vld [vmem:[#allocation2 + $0xf8] sm:$0xf0] }
  0x64   : > { %v3500_v28 = vld [vmem:[#allocation2 + $0x3d4] sm:$0xf0]  ;;  %v2563_v29 = vor.u32 %v3404_v22, %v2562_v21  ;;  %v2770_v2 = vld [vmem:[#allocation2 + $0x268] sm:$0xf] }
  0x65   : > { %1676 = vmatpush.bf16.msra.mxu0 %v2751_v35  ;;  %v2947_v35 = vor.u32 %v3500_v28, %v2946_v27  ;;  %v3392_v0 = vld [vmem:[#allocation2 + $0x74] sm:$0xf0]  ;;  %v2898_v5 = vld [vmem:[#allocation2 + $0x368] sm:$0xf] }
  0x66   : > { %1690 = vmatpush.bf16.msra.mxu1 %v2879_v36  ;;  %v2802_v36 = vld [vmem:[#allocation2 + $0x2a8] sm:$0xf]  ;;  %v3488_v6 = vld [vmem:[#allocation2 + $0x374] sm:$0xf0] }
  0x67   : > { %1717 = vmatpush.bf16.msrb.mxu2 %v3151_v34  ;;  %1704 = vmatpush.bf16.msra.mxu3 %v3007_v41  ;;  %v3400_v34 = vld [vmem:[#allocation2 + $0xb4] sm:$0xf0]  ;;  %v2803_v46 = vor.u32 %v3464_v38, %v2802_v36  ;;  %v2899_v14 = vor.u32 %v3488_v6, %v2898_v5  ;;  %v2754_v15 = vld [vmem:[#allocation2 + $0x248] sm:$0xf]  ;;  %v2583_v6 = vor.u32 %v3406_v56, %v2580_v57 }
  0x68   : > { %v3496_v41 = vld [vmem:[#allocation2 + $0x3b4] sm:$0xf0]  ;;  %v2547_v43 = vor.u32 %v3400_v34, %v2546_v33  ;;  %v2882_v18 = vld [vmem:[#allocation2 + $0x348] sm:$0xf] }
  0x69   : > { %1677 = vmatpush.bf16.msra.mxu0 %v2735_v52  ;;  %v2931_v49 = vor.u32 %v3496_v41, %v2930_v40  ;;  %v3460_v52 = vld [vmem:[#allocation2 + $0x294] sm:$0xf0]  ;;  %v2626_v21 = vld [vmem:[#allocation2 + $0x148] sm:$0xf] }
  0x6a   : > { %1691 = vmatpush.bf16.msra.mxu1 %v2863_v53  ;;  %v2675_v53 = vor.u32 %v3432_v45, %v2674_v44  ;;  %v2787_v62 = vor.u32 %v3460_v52, %v2786_v51  ;;  %v3424_v10 = vld [vmem:[#allocation2 + $0x174] sm:$0xf0]  ;;  %v2482_v24 = vld [vmem:[#allocation2 + $0x28] sm:$0xf] }
  0x6b   : > { %1718 = vmatpush.bf16.msrb.mxu2 %v3135_v48  ;;  %1705 = vmatpush.bf16.msra.mxu3 %v2991_v59  ;;  %v3396_v48 = vld [vmem:[#allocation2 + $0x94] sm:$0xf0]  ;;  %v2658_v59 = vld [vmem:[#allocation2 + $0x188] sm:$0xf] }
  0x6c   : > { %v2531_v58 = vor.u32 %v3396_v48, %v2530_v47  ;;  %v2659_v4 = vor.u32 %v3428_v61, %v2658_v59  ;;  %v3420_v22 = vld [vmem:[#allocation2 + $0x154] sm:$0xf0]  ;;  %v2738_v27 = vld [vmem:[#allocation2 + $0x228] sm:$0xf] }
  0x6d   : > { %1678 = vmatpush.bf16.msra.mxu0 %v2719_v7  ;;  %v2515_v7 = vor.u32 %v3392_v0, %v2514_v63  ;;  %v3384_v25 = vld [vmem:[#allocation2 + $0x34] sm:$0xf0]  ;;  %v2866_v30 = vld [vmem:[#allocation2 + $0x328] sm:$0xf] }
  0x6e   : > { %1692 = vmatpush.bf16.msra.mxu1 %v2847_v9  ;;  %v2642_v9 = vld [vmem:[#allocation2 + $0x168] sm:$0xf]  ;;  %v3448_v28 = vld [vmem:[#allocation2 + $0x234] sm:$0xf0] }
  0x6f   : > { %1719 = vmatpush.bf16.msrb.mxu2 %v3119_v3  ;;  %1706 = vmatpush.bf16.msra.mxu3 %v2975_v12  ;;  %v3456_v3 = vld [vmem:[#allocation2 + $0x274] sm:$0xf0]  ;;  %v2498_v12 = vld [vmem:[#allocation2 + $0x48] sm:$0xf]  ;;  %v2643_v17 = vor.u32 %v3424_v10, %v2642_v9  ;;  %v2739_v36 = vor.u32 %v3448_v28, %v2738_v27  ;;  %v3402_v9 = vld [vmem:[#allocation2 + $0xcc] sm:$0xf] }
  0x70   : > { %1679 = vmatmul.bf16.vlgmr.msra.gmra.mxu0 %v3760_v54  ;;  %v2771_v11 = vor.u32 %v3456_v3, %v2770_v2  ;;  %v3480_v31 = vld [vmem:[#allocation2 + $0x334] sm:$0xf0]  ;;  %v2610_v33 = vld [vmem:[#allocation2 + $0x128] sm:$0xf]  ;;  %v3438_v3 = vld [vmem:[#allocation2 + $0x1ec] sm:$0xf] }
  0x71   : > { %1769 = vmatpush.bf16.msrb.mxu0 %v2835_v19  ;;  %1693 = vmatmul.bf16.vlgmr.msra.gmra.mxu1 %v3764_v60  ;;  %v3484_v19 = vld [vmem:[#allocation2 + $0x354] sm:$0xf0]  ;;  %v2867_v41 = vor.u32 %v3480_v31, %v2866_v30  ;;  %v2722_v44 = vld [vmem:[#allocation2 + $0x208] sm:$0xf]  ;;  %v2564_v10 = vld [vmem:[#allocation2 + $0xd8] sm:$0xf0] }
  0x72   : > { %1741 = vmatpush.bf16.msrb.mxu1 %v2579_v13  ;;  %1707 = vmatmul.bf16.vlgmr.msra.gmra.mxu3 %v3784_v37  ;;  %v3388_v13 = vld [vmem:[#allocation2 + $0x54] sm:$0xf0]  ;;  %v3218_v61 = vld [vmem:[#allocation2 + $0x5e8] sm:$0xf]  ;;  %v2676_v30 = vld [vmem:[#allocation2 + $0x1b8] sm:$0xf0] }
  0x73   : > { %1734 = vmatpush.bf16.msrb.mxu3 %v3231_v16  ;;  %1720 = vmatpush.bf16.msrb.mxu2 %v3103_v20  ;;  %v3452_v16 = vld [vmem:[#allocation2 + $0x254] sm:$0xf0]  ;;  %v2499_v20 = vor.u32 %v3388_v13, %v2498_v12  ;;  %v3074_v63 = vld [vmem:[#allocation2 + $0x4c8] sm:$0xf] }
  0x74   : > { %v3416_v34 = vld [vmem:[#allocation2 + $0x134] sm:$0xf0]  ;;  %v3202_v13 = vld [vmem:[#allocation2 + $0x5c8] sm:$0xf] }
  0x75   : > { %1770 = vmatpush.bf16.msrb.mxu0 %v2819_v32  ;;  %v2483_v32 = vor.u32 %v3384_v25, %v2482_v24  ;;  %v3380_v38 = vld [vmem:[#allocation2 + $0x14] sm:$0xf0]  ;;  %v2611_v47 = vor.u32 %v3416_v34, %v2610_v33  ;;  %v3186_v25 = vld [vmem:[#allocation2 + $0x5a8] sm:$0xf]  ;;  %v3394_v33 = vld [vmem:[#allocation2 + $0x8c] sm:$0xf] }
  0x76   : > { %1742 = vmatpush.bf16.msrb.mxu1 %v2563_v29  ;;  %1721 = vmatmul.bf16.vlgmr.msrb.gmra.mxu2 %v3786_v42  ;;  %v2627_v29 = vor.u32 %v3420_v22, %v2626_v21  ;;  %v3536_v40 = vld [vmem:[#allocation2 + $0x4f4] sm:$0xf0]  ;;  %v3398_v21 = vld [vmem:[#allocation2 + $0xac] sm:$0xf]  ;;  %v2548_v22 = vld [vmem:[#allocation2 + $0xb8] sm:$0xf0] }
  0x77   : > { %1783 = vmatpush.bf16.msra.mxu2 %v2963_v23  ;;  %1755 = vmatpush.bf16.msra.mxu3 %v2707_v26  ;;  %v2755_v23 = vor.u32 %v3452_v16, %v2754_v15  ;;  %v2883_v26 = vor.u32 %v3484_v19, %v2882_v18  ;;  %v3444_v45 = vld [vmem:[#allocation2 + $0x214] sm:$0xf0]  ;;  %v3058_v15 = vld [vmem:[#allocation2 + $0x4a8] sm:$0xf]  ;;  %v2692_v18 = vld [vmem:[#allocation2 + $0x1d8] sm:$0xf0]  ;;  %v2567_v19 = vor.u32 %v3402_v9, %v2564_v10 }
  0x78   : > { %v3476_v48 = vld [vmem:[#allocation2 + $0x314] sm:$0xf0]  ;;  %v2723_v59 = vor.u32 %v3444_v45, %v2722_v44  ;;  %v3042_v27 = vld [vmem:[#allocation2 + $0x488] sm:$0xf]  ;;  %v2551_v31 = vor.u32 %v3398_v21, %v2548_v22  ;;  %v2532_v34 = vld [vmem:[#allocation2 + $0x98] sm:$0xf0] }
  0x79   : > { %1771 = vmatpush.bf16.msrb.mxu0 %v2803_v46  ;;  %v2850_v46 = vld [vmem:[#allocation2 + $0x308] sm:$0xf]  ;;  %v3572_v51 = vld [vmem:[#allocation2 + $0x614] sm:$0xf0]  ;;  %v2660_v44 = vld [vmem:[#allocation2 + $0x198] sm:$0xf0]  ;;  %v2535_v45 = vor.u32 %v3394_v33, %v2532_v34 }
  0x7a   : > { %1743 = vmatpush.bf16.msrb.mxu1 %v2547_v43  ;;  %v2594_v43 = vld [vmem:[#allocation2 + $0x108] sm:$0xf]  ;;  %v2851_v0 = vor.u32 %v3476_v48, %v2850_v46  ;;  %v3528_v16 = vld [vmem:[#allocation2 + $0x4b4] sm:$0xf0]  ;;  %v2516_v48 = vld [vmem:[#allocation2 + $0x78] sm:$0xf0] }
  0x7b   : > { %1784 = vmatpush.bf16.msra.mxu2 %v2947_v35  ;;  %1756 = vmatpush.bf16.msra.mxu3 %v2691_v39  ;;  %v2466_v35 = vld [vmem:[#allocation2 + $0x8] sm:$0xf]  ;;  %v3524_v28 = vld [vmem:[#allocation2 + $0x494] sm:$0xf0]  ;;  %v2628_v9 = vld [vmem:[#allocation2 + $0x158] sm:$0xf0] }
  0x7c   : > { %v3090_v39 = vld [vmem:[#allocation2 + $0x4e8] sm:$0xf]  ;;  %v2467_v52 = vor.u32 %v3380_v38, %v2466_v35  ;;  %v3043_v35 = vor.u32 %v3524_v28, %v3042_v27  ;;  %v3516_v57 = vld [vmem:[#allocation2 + $0x454] sm:$0xf0]  ;;  %v2612_v21 = vld [vmem:[#allocation2 + $0x138] sm:$0xf0] }
  0x7d   : > { %1772 = vmatpush.bf16.msrb.mxu0 %v2787_v62  ;;  %v3568_v62 = vld [vmem:[#allocation2 + $0x5f4] sm:$0xf0]  ;;  %v3170_v38 = vld [vmem:[#allocation2 + $0x588] sm:$0xf]  ;;  %v3378_v27 = vld [vmem:[#allocation2 + $0xc] sm:$0xf] }
  0x7e   : > { %1744 = vmatpush.bf16.msrb.mxu1 %v2531_v58  ;;  %v3091_v58 = vor.u32 %v3536_v40, %v3090_v39  ;;  %v3556_v39 = vld [vmem:[#allocation2 + $0x594] sm:$0xf0]  ;;  %v3026_v40 = vld [vmem:[#allocation2 + $0x468] sm:$0xf]  ;;  %v2468_v28 = vld [vmem:[#allocation2 + $0x18] sm:$0xf0] }
  0x7f   : > { %1785 = vmatpush.bf16.msra.mxu2 %v2931_v49  ;;  %1757 = vmatpush.bf16.msra.mxu3 %v2675_v53  ;;  %v3234_v49 = vld [vmem:[#allocation2 + $0x608] sm:$0xf]  ;;  %v3412_v53 = vld [vmem:[#allocation2 + $0x114] sm:$0xf0]  ;;  %v3171_v46 = vor.u32 %v3556_v39, %v3170_v38  ;;  %v2964_v33 = vld [vmem:[#allocation2 + $0x3f8] sm:$0xf0]  ;;  %v2471_v39 = vor.u32 %v3378_v27, %v2468_v28 }
  0x80   : > { %v3235_v2 = vor.u32 %v3572_v51, %v3234_v49  ;;  %v2595_v5 = vor.u32 %v3412_v53, %v2594_v43  ;;  %v3426_v43 = vld [vmem:[#allocation2 + $0x18c] sm:$0xf]  ;;  %v3552_v53 = vld [vmem:[#allocation2 + $0x574] sm:$0xf0]  ;;  %v3010_v56 = vld [vmem:[#allocation2 + $0x448] sm:$0xf] }
  0x81   : > { %1773 = vmatpush.bf16.msrb.mxu0 %v2771_v11  ;;  %v2663_v51 = vor.u32 %v3426_v43, %v2660_v44  ;;  %v3466_v38 = vld [vmem:[#allocation2 + $0x2cc] sm:$0xf]  ;;  %v2596_v43 = vld [vmem:[#allocation2 + $0x118] sm:$0xf0] }
  0x82   : > { %1745 = vmatpush.bf16.msrb.mxu1 %v2515_v7  ;;  %3241 = vmatmul.msk.bf16.vlgmr.msrb.gmra.mxu3 %vm1541_vm0, %v3776_v50  ;;  %v3219_v7 = vor.u32 %v3568_v62, %v3218_v61  ;;  %v2900_v28 = vld [vmem:[#allocation2 + $0x378] sm:$0xf0] }
  0x83   : > { %1786 = vmatpush.bf16.msra.mxu2 %v2915_v1  ;;  %1758 = vmatpush.bf16.msra.mxu3 %v2659_v4  ;;  %v3532_v1 = vld [vmem:[#allocation2 + $0x4d4] sm:$0xf0]  ;;  %v2708_v4 = vld [vmem:[#allocation2 + $0x1f8] sm:$0xf0] }
  0x84   : > { %v3075_v11 = vor.u32 %v3532_v1, %v3074_v63  ;;  %v2711_v12 = vor.u32 %v3438_v3, %v2708_v4  ;;  %v3386_v63 = vld [vmem:[#allocation2 + $0x4c] sm:$0xf]  ;;  %v3011_v1 = vor.u32 %v3516_v57, %v3010_v56  ;;  %v3138_v3 = vld [vmem:[#allocation2 + $0x548] sm:$0xf]  ;;  %v3548_v4 = vld [vmem:[#allocation2 + $0x554] sm:$0xf0] }
  0x85   : > { %1774 = vmatpush.bf16.msrb.mxu0 %v2755_v23  ;;  %v3059_v23 = vor.u32 %v3528_v16, %v3058_v15  ;;  %v3122_v16 = vld [vmem:[#allocation2 + $0x528] sm:$0xf]  ;;  %v3530_v56 = vld [vmem:[#allocation2 + $0x4cc] sm:$0xf]  ;;  %v3076_v57 = vld [vmem:[#allocation2 + $0x4d8] sm:$0xf0] }
  0x86   : > { %1746 = vmatpush.bf16.msrb.mxu1 %v2499_v20 }
  0x87   : > { %1787 = vmatpush.bf16.msra.mxu2 %v2899_v14  ;;  %1759 = vmatpush.bf16.msra.mxu3 %v2643_v17  ;;  %v3564_v14 = vld [vmem:[#allocation2 + $0x5d4] sm:$0xf0]  ;;  %v3434_v17 = vld [vmem:[#allocation2 + $0x1cc] sm:$0xf] }
  0x88   : > { %v3203_v20 = vor.u32 %v3564_v14, %v3202_v13  ;;  %v2695_v24 = vor.u32 %v3434_v17, %v2692_v18  ;;  %v2484_v13 = vld [vmem:[#allocation2 + $0x38] sm:$0xf0]  ;;  %v3544_v17 = vld [vmem:[#allocation2 + $0x534] sm:$0xf0]  ;;  %v2978_v18 = vld [vmem:[#allocation2 + $0x408] sm:$0xf] }
  0x89   : > { %1775 = vmatpush.bf16.msrb.mxu0 %v2739_v36 }
  0x8a   : > { %1747 = vmatpush.bf16.msrb.mxu1 %v2483_v32 }
  0x8b   : > { %1788 = vmatpush.bf16.msra.mxu2 %v2883_v26  ;;  %1760 = vmatpush.bf16.msra.mxu3 %v2627_v29  ;;  %v3560_v26 = vld [vmem:[#allocation2 + $0x5b4] sm:$0xf0]  ;;  %v3430_v29 = vld [vmem:[#allocation2 + $0x1ac] sm:$0xf] }
  0x8c   : > { %v3187_v32 = vor.u32 %v3560_v26, %v3186_v25  ;;  %v2679_v36 = vor.u32 %v3430_v29, %v2676_v30  ;;  %v3123_v25 = vor.u32 %v3544_v17, %v3122_v16  ;;  %v3106_v26 = vld [vmem:[#allocation2 + $0x508] sm:$0xf]  ;;  %v2916_v17 = vld [vmem:[#allocation2 + $0x398] sm:$0xf0] }
  0x8d   : > { %1776 = vmatpush.bf16.msrb.mxu0 %v2723_v59  ;;  %v2644_v59 = vld [vmem:[#allocation2 + $0x178] sm:$0xf0] }
  0x8e   : > { %1748 = vmatpush.bf16.msrb.mxu1 %v2467_v52  ;;  %v3154_v52 = vld [vmem:[#allocation2 + $0x568] sm:$0xf] }
  0x8f   : > { %1789 = vmatpush.bf16.msra.mxu2 %v2867_v41  ;;  %1761 = vmatpush.bf16.msra.mxu3 %v2611_v47  ;;  %v3520_v41 = vld [vmem:[#allocation2 + $0x474] sm:$0xf0]  ;;  %v3390_v47 = vld [vmem:[#allocation2 + $0x6c] sm:$0xf]  ;;  %v3155_v62 = vor.u32 %v3552_v53, %v3154_v52  ;;  %v2948_v53 = vld [vmem:[#allocation2 + $0x3d8] sm:$0xf0] }
  0x90   : > { %1777 = vmatmul.bf16.vlgmr.msrb.gmra.mxu0 %v3760_v54  ;;  %v3027_v49 = vor.u32 %v3520_v41, %v3026_v40  ;;  %v2519_v61 = vor.u32 %v3390_v47, %v2516_v48  ;;  %v2820_v40 = vld [vmem:[#allocation2 + $0x2d8] sm:$0xf0]  ;;  %v3410_v41 = vld [vmem:[#allocation2 + $0x10c] sm:$0xf] }
  0x91   : > { %1832 = vmatpush.bf16.msra.mxu0 %v3235_v2  ;;  %1749 = vmatmul.bf16.vlgmr.msrb.gmra.mxu1 %v3762_v55  ;;  %v2599_v52 = vor.u32 %v3410_v41, %v2596_v43  ;;  %v3514_v41 = vld [vmem:[#allocation2 + $0x44c] sm:$0xf]  ;;  %v3012_v43 = vld [vmem:[#allocation2 + $0x458] sm:$0xf0] }
  0x92   : > { %1797 = vmatpush.bf16.msra.mxu1 %v3091_v58  ;;  %v3422_v58 = vld [vmem:[#allocation2 + $0x16c] sm:$0xf] }
  0x93   : > { %1790 = vmatpush.bf16.msra.mxu2 %v2851_v0  ;;  %1762 = vmatpush.bf16.msra.mxu3 %v2595_v5  ;;  %v2500_v0 = vld [vmem:[#allocation2 + $0x58] sm:$0xf0]  ;;  %v2647_v2 = vor.u32 %v3422_v58, %v2644_v59  ;;  %v2994_v5 = vld [vmem:[#allocation2 + $0x428] sm:$0xf]  ;;  %v3462_v59 = vld [vmem:[#allocation2 + $0x2ac] sm:$0xf] }
  0x94   : > { %v2503_v10 = vor.u32 %v3386_v63, %v2500_v0  ;;  %v3204_v63 = vld [vmem:[#allocation2 + $0x5d8] sm:$0xf0] }
  0x95   : > { %1853 = vmatpush.bf16.msrb.mxu0 %v2711_v12  ;;  %v3382_v12 = vld [vmem:[#allocation2 + $0x2c] sm:$0xf] }
  0x96   : > { %1798 = vmatpush.bf16.msra.mxu1 %v3075_v11  ;;  %1763 = vmatmul.bf16.vlgmr.msra.gmra.mxu3 %v3770_v8  ;;  %v3139_v11 = vor.u32 %v3548_v4, %v3138_v3  ;;  %v2487_v22 = vor.u32 %v3382_v12, %v2484_v13  ;;  %v2932_v4 = vld [vmem:[#allocation2 + $0x3b8] sm:$0xf0] }
  0x97   : > { %1839 = vmatpush.bf16.msrb.mxu2 %v2583_v6  ;;  %1811 = vmatpush.bf16.msrb.mxu3 %v3219_v7  ;;  %v3512_v6 = vld [vmem:[#allocation2 + $0x434] sm:$0xf0]  ;;  %v3418_v7 = vld [vmem:[#allocation2 + $0x14c] sm:$0xf]  ;;  %v3188_v12 = vld [vmem:[#allocation2 + $0x5b8] sm:$0xf0] }
  0x98   : > { %1791 = vmatmul.bf16.vlgmr.msra.gmra.mxu2 %v3764_v60  ;;  %v2995_v14 = vor.u32 %v3512_v6, %v2994_v5  ;;  %v2631_v15 = vor.u32 %v3418_v7, %v2628_v9  ;;  %v3526_v5 = vld [vmem:[#allocation2 + $0x4ac] sm:$0xf]  ;;  %v3060_v6 = vld [vmem:[#allocation2 + $0x4b8] sm:$0xf0] }
  0x99   : > { %1854 = vmatpush.bf16.msrb.mxu0 %v2695_v24  ;;  %v2836_v24 = vld [vmem:[#allocation2 + $0x2f8] sm:$0xf0]  ;;  %v3458_v9 = vld [vmem:[#allocation2 + $0x28c] sm:$0xf] }
  0x9a   : > { %1799 = vmatpush.bf16.msra.mxu1 %v3059_v23  ;;  %v3470_v23 = vld [vmem:[#allocation2 + $0x2ec] sm:$0xf] }
  0x9b   : > { %1840 = vmatpush.bf16.msrb.mxu2 %v2567_v19  ;;  %1812 = vmatpush.bf16.msrb.mxu3 %v3203_v20  ;;  %v3508_v19 = vld [vmem:[#allocation2 + $0x414] sm:$0xf0]  ;;  %v3414_v20 = vld [vmem:[#allocation2 + $0x12c] sm:$0xf]  ;;  %v2839_v34 = vor.u32 %v3470_v23, %v2836_v24 }
  0x9c   : > { %v2979_v29 = vor.u32 %v3508_v19, %v2978_v18  ;;  %v2615_v30 = vor.u32 %v3414_v20, %v2612_v21  ;;  %v3522_v18 = vld [vmem:[#allocation2 + $0x48c] sm:$0xf]  ;;  %v3044_v19 = vld [vmem:[#allocation2 + $0x498] sm:$0xf0] }
  0x9d   : > { %1855 = vmatpush.bf16.msrb.mxu0 %v2679_v36  ;;  %v3092_v36 = vld [vmem:[#allocation2 + $0x4f8] sm:$0xf0]  ;;  %v3454_v21 = vld [vmem:[#allocation2 + $0x26c] sm:$0xf] }
  0x9e   : > { %1800 = vmatpush.bf16.msra.mxu1 %v3043_v35  ;;  %v3534_v35 = vld [vmem:[#allocation2 + $0x4ec] sm:$0xf] }
  0x9f   : > { %1841 = vmatpush.bf16.msrb.mxu2 %v2551_v31  ;;  %1813 = vmatpush.bf16.msrb.mxu3 %v3187_v32  ;;  %v3540_v31 = vld [vmem:[#allocation2 + $0x514] sm:$0xf0]  ;;  %v3502_v32 = vld [vmem:[#allocation2 + $0x3ec] sm:$0xf]  ;;  %v3095_v48 = vor.u32 %v3534_v35, %v3092_v36 }
  0xa0   : > { %3242 = vmatmul.msk.bf16.vlgmr.msra.gmra.mxu0 %vm1541_vm0, %v3776_v50  ;;  %v3107_v44 = vor.u32 %v3540_v31, %v3106_v26  ;;  %v2967_v47 = vor.u32 %v3502_v32, %v2964_v33  ;;  %v3554_v23 = vld [vmem:[#allocation2 + $0x58c] sm:$0xf] }
  0xa1   : > { %1856 = vmatpush.bf16.msrb.mxu0 %v2663_v51  ;;  %v2823_v51 = vor.u32 %v3466_v38, %v2820_v40  ;;  %v3486_v26 = vld [vmem:[#allocation2 + $0x36c] sm:$0xf]  ;;  %v2884_v40 = vld [vmem:[#allocation2 + $0x358] sm:$0xf0] }
  0xa2   : > { %1801 = vmatpush.bf16.msra.mxu1 %v3027_v49  ;;  %v3498_v49 = vld [vmem:[#allocation2 + $0x3cc] sm:$0xf]  ;;  %v2903_v35 = vor.u32 %v3486_v26, %v2900_v28  ;;  %v3579_v26 = vld [vmem:[%s3955_s4 + $0x30] sm:$0xff] }
  0xa3   : > { %1842 = vmatpush.bf16.msrb.mxu2 %v2535_v45  ;;  %1814 = vmatpush.bf16.msrb.mxu3 %v3171_v46  ;;  %v3566_v45 = vld [vmem:[#allocation2 + $0x5ec] sm:$0xf]  ;;  %v3220_v46 = vld [vmem:[#allocation2 + $0x5f8] sm:$0xf0]  ;;  %v2951_v0 = vor.u32 %v3498_v49, %v2948_v53 }
  0xa4   : > { %v3223_v58 = vor.u32 %v3566_v45, %v3220_v46  ;;  %v3450_v32 = vld [vmem:[#allocation2 + $0x24c] sm:$0xf]  ;;  %v2740_v46 = vld [vmem:[#allocation2 + $0x238] sm:$0xf0] }
  0xa5   : > { %1857 = vmatpush.bf16.msrb.mxu0 %v2647_v2  ;;  %v3494_v2 = vld [vmem:[#allocation2 + $0x3ac] sm:$0xf] }
  0xa6   : > { %1802 = vmatpush.bf16.msra.mxu1 %v3011_v1  ;;  %v3079_v1 = vor.u32 %v3530_v56, %v3076_v57  ;;  %v2935_v13 = vor.u32 %v3494_v2, %v2932_v4  ;;  %v3550_v33 = vld [vmem:[#allocation2 + $0x56c] sm:$0xf]  ;;  %v2868_v57 = vld [vmem:[#allocation2 + $0x338] sm:$0xf0] }
  0xa7   : > { %1843 = vmatpush.bf16.msrb.mxu2 %v2519_v61  ;;  %1815 = vmatpush.bf16.msrb.mxu3 %v3155_v62  ;;  %v2804_v61 = vld [vmem:[#allocation2 + $0x2b8] sm:$0xf0]  ;;  %v3562_v62 = vld [vmem:[#allocation2 + $0x5cc] sm:$0xf] }
  0xa8   : > { %v2807_v3 = vor.u32 %v3462_v59, %v2804_v61  ;;  %v3207_v7 = vor.u32 %v3562_v62, %v3204_v63  ;;  %v3482_v38 = vld [vmem:[#allocation2 + $0x34c] sm:$0xf]  ;;  %v2996_v59 = vld [vmem:[#allocation2 + $0x438] sm:$0xf0] }
  0xa9   : > { %1858 = vmatpush.bf16.msrb.mxu0 %v2631_v15  ;;  %v3490_v15 = vld [vmem:[#allocation2 + $0x38c] sm:$0xf]  ;;  %v2887_v49 = vor.u32 %v3482_v38, %v2884_v40  ;;  %v3124_v2 = vld [vmem:[#allocation2 + $0x538] sm:$0xf0] }
  0xaa   : > { %1803 = vmatpush.bf16.msra.mxu1 %v2995_v14  ;;  %v3063_v14 = vor.u32 %v3526_v5, %v3060_v6  ;;  %v2919_v24 = vor.u32 %v3490_v15, %v2916_v17  ;;  %v3446_v45 = vld [vmem:[#allocation2 + $0x22c] sm:$0xf]  ;;  %v3236_v4 = vld [vmem:[#allocation2 + $0x618] sm:$0xf0] }
  0xab   : > { %1844 = vmatpush.bf16.msrb.mxu2 %v2503_v10  ;;  %1816 = vmatpush.bf16.msrb.mxu3 %v3139_v11  ;;  %v2788_v10 = vld [vmem:[#allocation2 + $0x298] sm:$0xf0]  ;;  %v3558_v11 = vld [vmem:[#allocation2 + $0x5ac] sm:$0xf]  ;;  %v2743_v56 = vor.u32 %v3446_v45, %v2740_v46  ;;  %v3575_v46 = vld [vmem:[%s3955_s4 + $0x10] sm:$0xff] }
  0xac   : > { %v2791_v16 = vor.u32 %v3458_v9, %v2788_v10  ;;  %v3191_v20 = vor.u32 %v3558_v11, %v3188_v12  ;;  %v3442_v63 = vld [vmem:[#allocation2 + $0x20c] sm:$0xf]  ;;  %v2852_v11 = vld [vmem:[#allocation2 + $0x318] sm:$0xf0] }
  0xad   : > { %1859 = vmatpush.bf16.msrb.mxu0 %v2615_v30  ;;  %v3028_v30 = vld [vmem:[#allocation2 + $0x478] sm:$0xf0]  ;;  %v3474_v10 = vld [vmem:[#allocation2 + $0x30c] sm:$0xf] }
  0xae   : > { %1804 = vmatpush.bf16.msra.mxu1 %v2979_v29  ;;  %v3518_v29 = vld [vmem:[#allocation2 + $0x46c] sm:$0xf] }
  0xaf   : > { %1845 = vmatpush.bf16.msrb.mxu2 %v2487_v22  ;;  %1817 = vmatpush.bf16.msrb.mxu3 %v3123_v25  ;;  %v2772_v22 = vld [vmem:[#allocation2 + $0x278] sm:$0xf0]  ;;  %v3047_v25 = vor.u32 %v3522_v18, %v3044_v19  ;;  %v3031_v36 = vor.u32 %v3518_v29, %v3028_v30  ;;  %v1554_v53 = vpop.f32.mrf.mxu0  ;;  %v3538_v17 = vld [vmem:[#allocation2 + $0x50c] sm:$0xf]  ;;  %v2855_v19 = vor.u32 %v3474_v10, %v2852_v11 }
  0xb0   : > { %v2775_v27 = vor.u32 %v3454_v21, %v2772_v22  ;;  %v3108_v18 = vld [vmem:[#allocation2 + $0x518] sm:$0xf0] }
  0xb1   : > { %1805 = vmatmul.bf16.vlgmr.msra.gmra.mxu1 %v3784_v37  ;;  %1860 = vmatpush.bf16.msrb.mxu0 %v2599_v52  ;;  %v3478_v52 = vld [vmem:[#allocation2 + $0x32c] sm:$0xf]  ;;  %v3580_v21 = vld [vmem:[%s3955_s4 + $0x38] sm:$0xff] }
  0xb2   : > { %1867 = vmatpush.bf16.msrb.mxu1 %v2839_v34  ;;  %v3156_v34 = vld [vmem:[#allocation2 + $0x578] sm:$0xf0]  ;;  %v1568_v61 = vpop.f32.mrf.mxu1  ;;  %v2871_v5 = vor.u32 %v3478_v52, %v2868_v57  ;;  %v3573_v57 = vld [vmem:[%s3955_s4] sm:$0xff] }
  0xb3   : > { %1846 = vmatpush.bf16.msrb.mxu2 %v2471_v39  ;;  %1818 = vmatpush.bf16.msrb.mxu3 %v3107_v44  ;;  %v3159_v44 = vor.u32 %v3550_v33, %v3156_v34  ;;  %v3577_v33 = vld [vmem:[%s3955_s4 + $0x20] sm:$0xff] }
  0xb4   : > { %1861 = vmatmul.bf16.vlgmr.msrb.gmra.mxu0 %v3770_v8  ;;  %v2756_v8 = vld [vmem:[#allocation2 + $0x258] sm:$0xf0] }
  0xb5   : > { %1909 = vmatpush.bf16.msra.mxu0 %v3223_v58  ;;  %v2759_v39 = vor.u32 %v3450_v32, %v2756_v8  ;;  %v3510_v58 = vld [vmem:[#allocation2 + $0x42c] sm:$0xf] }
  0xb6   : > { %1868 = vmatpush.bf16.msrb.mxu1 %v2823_v51  ;;  %1819 = vmatmul.bf16.vlgmr.msrb.gmra.mxu3 %v3786_v42  ;;  %v3015_v51 = vor.u32 %v3514_v41, %v3012_v43  ;;  %v2999_v6 = vor.u32 %v3510_v58, %v2996_v59  ;;  %v3587_v41 = vld [vmem:[%s3955_s4 + $0x70] sm:$0xff] }
  0xb7   : > { %1881 = vmatpush.bf16.msra.mxu3 %v2967_v47  ;;  %1895 = vmatpush.bf16.msra.mxu2 %v3095_v48  ;;  %v3546_v47 = vld [vmem:[#allocation2 + $0x54c] sm:$0xf]  ;;  %v3140_v48 = vld [vmem:[#allocation2 + $0x558] sm:$0xf0] }
  0xb8   : > { %1847 = vmatmul.bf16.vlgmr.msrb.gmra.mxu2 %v3762_v55  ;;  %v3172_v55 = vld [vmem:[#allocation2 + $0x598] sm:$0xf0]  ;;  %v3143_v62 = vor.u32 %v3546_v47, %v3140_v48  ;;  %v3586_v48 = vld [vmem:[%s3955_s4 + $0x68] sm:$0xff] }
  0xb9   : > { %1910 = vmatpush.bf16.msra.mxu0 %v3207_v7  ;;  %v3175_v31 = vor.u32 %v3554_v23, %v3172_v55  ;;  %v1582_v7 = vpop.f32.mrf.mxu2  ;;  %v3111_v23 = vor.u32 %v3538_v17, %v3108_v18  ;;  %v1556_v55 = vpop.f32.mrf.mxu0 }
  0xba   : > { %1869 = vmatpush.bf16.msrb.mxu1 %v2807_v3  ;;  %v3570_v3 = vld [vmem:[#allocation2 + $0x60c] sm:$0xf] }
  0xbb   : > { %1882 = vmatpush.bf16.msra.mxu3 %v2951_v0  ;;  %1896 = vmatpush.bf16.msra.mxu2 %v3079_v1  ;;  %v2724_v0 = vld [vmem:[#allocation2 + $0x218] sm:$0xf0]  ;;  %v3542_v1 = vld [vmem:[#allocation2 + $0x52c] sm:$0xf]  ;;  %v3239_v15 = vor.u32 %v3570_v3, %v3236_v4  ;;  %v3581_v4 = vld [vmem:[%s3955_s4 + $0x40] sm:$0xff] }
  0xbc   : > { %v2727_v9 = vor.u32 %v3442_v63, %v2724_v0  ;;  %v3127_v12 = vor.u32 %v3542_v1, %v3124_v2  ;;  %v3583_v0 = vld [vmem:[%s3955_s4 + $0x50] sm:$0xff]  ;;  %v3582_v1 = vld [vmem:[%s3955_s4 + $0x48] sm:$0xff] }
  0xbd   : > { %1911 = vmatpush.bf16.msra.mxu0 %v3191_v20 }
  0xbe   : > { %1870 = vmatpush.bf16.msrb.mxu1 %v2791_v16  ;;  %v3811_v16 = vld [vmem:[%s3954_s3] sm:$0xf] }
  0xbf   : > { %1883 = vmatpush.bf16.msra.mxu3 %v2935_v13  ;;  %1897 = vmatpush.bf16.msra.mxu2 %v3063_v14  ;;  %v3506_v13 = vld [vmem:[#allocation2 + $0x40c] sm:$0xf]  ;;  %v2980_v14 = vld [vmem:[#allocation2 + $0x418] sm:$0xf0]  ;;  %v553_v22 = vperm.slane %v3811_v16, 0 }
  0xc0   : > { %v2983_v20 = vor.u32 %v3506_v13, %v2980_v14 }
  0xc1   : > { %1912 = vmatpush.bf16.msra.mxu0 %v3175_v31  ;;  %v1557_v28 = vadd.f32 %v1556_v55, %v553_v22  ;;  %v1584_v29 = vpop.f32.mrf.mxu2  ;;  %v3595_v55 = vld [vmem:[%s3955_s4 + $0xb0] sm:$0xff] }
  0xc2   : > { %1871 = vmatpush.bf16.msrb.mxu1 %v2775_v27  ;;  %v1555_v27 = vadd.f32 %v1554_v53, %v553_v22  ;;  %v3585_v53 = vld [vmem:[%s3955_s4 + $0x60] sm:$0xff] }
  0xc3   : > { %1884 = vmatpush.bf16.msra.mxu3 %v2919_v24  ;;  %1898 = vmatpush.bf16.msra.mxu2 %v3047_v25  ;;  %v1570_v24 = vpop.f32.mrf.mxu1  ;;  %v1596_v25 = vpop.f32.mrf.mxu3 }
  0xc4   : > { %v1569_v30 = vadd.f32 %v1568_v61, %v1555_v27  ;;  %v1571_v31 = vadd.f32 %v1570_v24, %v1557_v28  ;;  %v3584_v61 = vld [vmem:[%s3955_s4 + $0x58] sm:$0xff] }
  0xc5   : > { %1913 = vmatpush.bf16.msra.mxu0 %v3159_v44 }
  0xc6   : > { %1872 = vmatpush.bf16.msrb.mxu1 %v2759_v39  ;;  %v1583_v34 = vadd.f32 %v1582_v7, %v1569_v30  ;;  %v554_v7 = vperm.slane %v3811_v16, 1 }
  0xc7   : > { %1885 = vmatpush.bf16.msra.mxu3 %v2903_v35  ;;  %1899 = vmatpush.bf16.msra.mxu2 %v3031_v36  ;;  %v3576_v36 = vld [vmem:[%s3955_s4 + $0x18] sm:$0xff] }
  0xc8   : > { %v1597_v38 = vadd.f32 %v1596_v25, %v1583_v34 }
  0xc9   : > { %1914 = vmatpush.bf16.msra.mxu0 %v3143_v62 }
  0xca   : > { %1873 = vmatpush.bf16.msrb.mxu1 %v2743_v56 }
  0xcb   : > { %1886 = vmatpush.bf16.msra.mxu3 %v2887_v49  ;;  %1900 = vmatpush.bf16.msra.mxu2 %v3015_v51  ;;  %v1598_v35 = vpop.f32.mrf.mxu3 }
  0xcd   : > { %1915 = vmatpush.bf16.msra.mxu0 %v3127_v12  ;;  %v1610_v32 = vpop.f32.mrf.mxu0 }
  0xce   : > { %1874 = vmatpush.bf16.msrb.mxu1 %v2727_v9  ;;  %v1624_v8 = vpop.f32.mrf.mxu1  ;;  %v1611_v43 = vadd.f32 %v1610_v32, %v1597_v38  ;;  %v3593_v32 = vld [vmem:[%s3955_s4 + $0xa0] sm:$0xff] }
  0xcf   : > { %1887 = vmatpush.bf16.msra.mxu3 %v2871_v5  ;;  %1901 = vmatpush.bf16.msra.mxu2 %v2999_v6 }
  0xd0   : > { %v1625_v49 = vadd.f32 %v1624_v8, %v1611_v43 }
  0xd1   : > { %1875 = vmatmul.bf16.vlgmr.msrb.gmra.mxu1 %v3760_v54  ;;  %1916 = vmatpush.bf16.msra.mxu0 %v3111_v23  ;;  %v3578_v54 = vld [vmem:[%s3955_s4 + $0x28] sm:$0xff] }
  0xd2   : > { %1930 = vmatpush.bf16.msra.mxu1 %v3239_v15 }
  0xd3   : > { %1888 = vmatpush.bf16.msra.mxu3 %v2855_v19  ;;  %1902 = vmatpush.bf16.msra.mxu2 %v2983_v20 }
  0xd4   : > { %1917 = vmatmul.bf16.vlgmr.msra.gmra.mxu0 %v3786_v42  ;;  %v3588_v42 = vld [vmem:[%s3955_s4 + $0x78] sm:$0xff] }
  0xd5   : > { %v1612_v40 = vpop.f32.mrf.mxu0  ;;  %v1652_v59 = vpop.f32.mrf.mxu3 }
  0xd6   : > { %1889 = vmatmul.bf16.vlgmr.msra.gmra.mxu3 %v3764_v60  ;;  %1903 = vmatmul.bf16.vlgmr.msra.gmra.mxu2 %v3784_v37  ;;  %v1585_v60 = vadd.f32 %v1584_v29, %v1571_v31  ;;  %v1638_v37 = vpop.f32.mrf.mxu2  ;;  %v1626_v45 = vpop.f32.mrf.mxu1  ;;  %v1653_v11 = vadd.f32 %v1652_v59, %v554_v7 }
  0xd7   : > { %2209 = vmatpush.bf16.msrb.mxu3 %v3580_v21  ;;  %2223 = vmatpush.bf16.msrb.mxu1 %v3588_v42  ;;  %v1639_v56 = vadd.f32 %v1638_v37, %v1625_v49  ;;  %v3596_v21 = vld [vmem:[%s3955_s4 + $0xb8] sm:$0xff] }
  0xd8   : > { %v1599_v39 = vadd.f32 %v1598_v35, %v1585_v60  ;;  %2237 = vmatpush.bf16.msrb.mxu2 %v3596_v21  ;;  %v3592_v37 = vld [vmem:[%s3955_s4 + $0x98] sm:$0xff] }
  0xd9   : > { %v1937_v62 = vmax.f32 %v1639_v56, 0.0 }
  0xda   : > { %v1613_v44 = vadd.f32 %v1612_v40, %v1599_v39  ;;  %v3590_v39 = vld [vmem:[%s3955_s4 + $0x88] sm:$0xff]  ;;  %v3589_v40 = vld [vmem:[%s3955_s4 + $0x80] sm:$0xff] }
  0xdb   : > { %2210 = vmatpush.bf16.msrb.mxu3 %v3579_v26  ;;  %2224 = vmatpush.bf16.msrb.mxu1 %v3587_v41 }
  0xdc   : > { %v1627_v47 = vadd.f32 %v1626_v45, %v1613_v44  ;;  %2238 = vmatpush.bf16.msrb.mxu2 %v3595_v55  ;;  %v555_v44 = vperm.slane %v3811_v16, 2 }
  0xdd   : > { %v1654_v3 = vpop.f32.mrf.mxu3 }
  0xde   : > { %v1640_v51 = vpop.f32.mrf.mxu2  ;;  %v1655_v12 = vadd.f32 %v1654_v3, %v554_v7 }
  0xdf   : > { %2211 = vmatpush.bf16.msrb.mxu3 %v3578_v54  ;;  %2225 = vmatpush.bf16.msrb.mxu1 %v3586_v48  ;;  %v1641_v52 = vadd.f32 %v1640_v51, %v1627_v47  ;;  %v3594_v54 = vld [vmem:[%s3955_s4 + $0xa8] sm:$0xff]  ;;  %v3603_v48 = vld [vmem:[%s3955_s4 + $0xf0] sm:$0xff] }
  0xe0   : > { %2239 = vmatpush.bf16.msrb.mxu2 %v3594_v54 }
  0xe1   : > { %3243 = vmatmul.msk.bf16.vlgmr.msra.gmra.mxu1 %vm1541_vm0, %v3776_v50  ;;  %v3574_v50 = vld [vmem:[%s3955_s4 + $0x8] sm:$0xff]  ;;  %v1941_v58 = vmax.f32 %v1641_v52, 0.0 }
  0xe3   : > { %2212 = vmatpush.bf16.msrb.mxu3 %v3577_v33  ;;  %2226 = vmatpush.bf16.msrb.mxu1 %v3585_v53  ;;  %v1945_v63 = vpack.c.bf16 %v1941_v58, %v1937_v62 }
  0xe4   : > { %2240 = vmatpush.bf16.msrb.mxu2 %v3593_v32 }
  0xe6   : > { %v1666_v2 = vpop.f32.mrf.mxu2 }
  0xe7   : > { %2213 = vmatpush.bf16.msrb.mxu3 %v3576_v36  ;;  %2227 = vmatpush.bf16.msrb.mxu1 %v3584_v61  ;;  %v1667_v14 = vadd.f32 %v1666_v2, %v1653_v11  ;;  %v3591_v36 = vld [vmem:[%s3955_s4 + $0x90] sm:$0xff]  ;;  %v3601_v61 = vld [vmem:[%s3955_s4 + $0xe0] sm:$0xff] }
  0xe8   : > { %2241 = vmatpush.bf16.msrb.mxu2 %v3592_v37 }
  0xeb   : > { %2214 = vmatpush.bf16.msrb.mxu3 %v3575_v46  ;;  %2228 = vmatpush.bf16.msrb.mxu1 %v3583_v0  ;;  %v3604_v46 = vld [vmem:[%s3955_s4 + $0xf8] sm:$0xff] }
  0xec   : > { %2242 = vmatpush.bf16.msrb.mxu2 %v3591_v36  ;;  %2251 = vmatpush.bf16.msrb.mxu0 %v3604_v46 }
  0xed   : > { %v1680_v5 = vpop.f32.mrf.mxu0 }
  0xee   : > { %v1668_v9 = vpop.f32.mrf.mxu2  ;;  %v1694_v10 = vpop.f32.mrf.mxu1  ;;  %v1681_v19 = vadd.f32 %v1680_v5, %v1667_v14 }
  0xef   : > { %2215 = vmatpush.bf16.msrb.mxu3 %v3574_v50  ;;  %2229 = vmatpush.bf16.msrb.mxu1 %v3582_v1  ;;  %v1669_v18 = vadd.f32 %v1668_v9, %v1655_v12 }
  0xf0   : > { %v1695_v23 = vadd.f32 %v1694_v10, %v1681_v19  ;;  %2243 = vmatpush.bf16.msrb.mxu2 %v3590_v39  ;;  %2252 = vmatpush.bf16.msrb.mxu0 %v3603_v48  ;;  %v3599_v10 = vld [vmem:[%s3955_s4 + $0xd0] sm:$0xff] }
  0xf3   : > { %2216 = vmatpush.bf16.msrb.mxu3 %v3573_v57  ;;  %2230 = vmatpush.bf16.msrb.mxu1 %v3581_v4  ;;  %v3602_v57 = vld [vmem:[%s3955_s4 + $0xe8] sm:$0xff]  ;;  %v3600_v4 = vld [vmem:[%s3955_s4 + $0xd8] sm:$0xff] }
  0xf4   : > { %2244 = vmatpush.bf16.msrb.mxu2 %v3589_v40  ;;  %2253 = vmatpush.bf16.msrb.mxu0 %v3602_v57 }
  0xf5   : > { %v1708_v6 = vpop.f32.mrf.mxu3  ;;  %v1682_v15 = vpop.f32.mrf.mxu0 }
  0xf6   : > { %2217 = vmatmul.bf16.vlgmr.msrb.gmra.mxu3 %v1945_v63  ;;  %v1683_v20 = vadd.f32 %v1682_v15, %v1669_v18  ;;  %v1696_v22 = vpop.f32.mrf.mxu1  ;;  %v1709_v25 = vadd.f32 %v1708_v6, %v1695_v23  ;;  %v556_v23 = vperm.slane %v3811_v16, 3 }
  0xf8   : > { %v1697_v26 = vadd.f32 %v1696_v22, %v1683_v20  ;;  %2254 = vmatpush.bf16.msrb.mxu0 %v3601_v61  ;;  %v3597_v22 = vld [vmem:[%s3955_s4 + $0xc0] sm:$0xff] }
  0xf9   : > { %v1722_v17 = vpop.f32.mrf.mxu2 }
  0xfa   : > { %v1723_v29 = vadd.f32 %v1722_v17, %v1709_v25  ;;  %v3598_v17 = vld [vmem:[%s3955_s4 + $0xc8] sm:$0xff] }
  0xfc   : > { %2255 = vmatpush.bf16.msrb.mxu0 %v3600_v4 }
  0xfd   : > { %v1710_v13 = vpop.f32.mrf.mxu3 }
  0xfe   : > { %v1711_v27 = vadd.f32 %v1710_v13, %v1697_v26 }
 0x100   : > { %2256 = vmatpush.bf16.msrb.mxu0 %v3599_v10 }
 0x101   : > { %v1724_v28 = vpop.f32.mrf.mxu2 }
 0x102   : > { %v1725_v30 = vadd.f32 %v1724_v28, %v1711_v27 }
 0x104   : > { %2257 = vmatpush.bf16.msrb.mxu0 %v3598_v17 }
 0x105   : > { %v1736_v24 = vpop.f32.mrf.mxu3 }
 0x106   : > { %v1737_v31 = vadd.f32 %v1736_v24, %v1723_v29 }
 0x108   : > { %v1938_v34 = vmax.f32 %v1737_v31, 0.0  ;;  %2258 = vmatpush.bf16.msrb.mxu0 %v3597_v22  ;;  %v2293_v22 = vlaneseq }
 0x10d   : > { %v1738_v8 = vpop.f32.mrf.mxu3  ;;  %v1778_v42 = vpop.f32.mrf.mxu0 }
 0x10e   : > { %v1739_v33 = vadd.f32 %v1738_v8, %v1725_v30  ;;  %v1750_v38 = vpop.f32.mrf.mxu1 }
 0x10f   : > { %v1751_v47 = vadd.f32 %v1750_v38, %v555_v44 }
 0x110   : > { %v1942_v60 = vmax.f32 %v1739_v33, 0.0 }
 0x112   : > { %v1946_v35 = vpack.c.bf16 %v1942_v60, %v1938_v34  ;;  %v2269_v34 = vld [vmem:[%s322_s26] sm:$0xff] }
 0x113   : > { %2273 = vrot.lane.b32.xlu1 %v2269_v34, %s3679_s27 }
 0x114   : > { %2231 = vmatmul.bf16.vlgmr.msrb.gmra.mxu1 %v1946_v35 }
 0x115   : > { %v1780_v43 = vpop.f32.mrf.mxu0 }
 0x116   : > { %v1752_v45 = vpop.f32.mrf.mxu1 }
 0x117   : > { %v1753_v53 = vadd.f32 %v1752_v45, %v555_v44 }
 0x119   : > { %v1764_v41 = vpop.f32.mrf.mxu3 }
 0x11a   : > { %v1765_v52 = vadd.f32 %v1764_v41, %v1751_v47  ;;  %v2270_v41 = vld [vmem:[%s322_s26 + $0x8] sm:$0xff] }
 0x11b   : > { %v1792_v51 = vpop.f32.mrf.mxu2  ;;  %2275 = vrot.lane.b32.xlu1 %v2270_v41, %s3679_s27 }
 0x11c   : > { %v1779_v58 = vadd.f32 %v1778_v42, %v1765_v52 }
 0x11d   : > { %v1834_v49 = vpop.f32.mrf.mxu0 }
 0x11e   : > { %v1793_v63 = vadd.f32 %v1792_v51, %v1779_v58 }
 0x121   : > { %v1766_v50 = vpop.f32.mrf.mxu3 }
 0x122   : > { %v1767_v59 = vadd.f32 %v1766_v50, %v1753_v53  ;;  %v3629_v50 = vld [vmem:[%s3956_s5] ss:$0 sm:$0xff] }
 0x123   : > { %v1794_v2 = vpop.f32.mrf.mxu2 }
 0x124   : > { %v1781_v0 = vadd.f32 %v1780_v43, %v1767_v59 }
 0x125   : > { %v1836_v1 = vpop.f32.mrf.mxu0 }
 0x126   : > { %v1795_v6 = vadd.f32 %v1794_v2, %v1781_v0 }
 0x12e   : > { %v1806_v56 = vpop.f32.mrf.mxu1 }
 0x12f   : > { %v1807_v3 = vadd.f32 %v1806_v56, %v1793_v63 }
 0x131   : > { %v1862_v15 = vpop.f32.mrf.mxu0 }
 0x136   : > { %v1808_v5 = vpop.f32.mrf.mxu1 }
 0x137   : > { %v1809_v9 = vadd.f32 %v1808_v5, %v1795_v6 }
 0x139   : > { %v1820_v62 = vpop.f32.mrf.mxu3  ;;  %v1864_v25 = vpop.f32.mrf.mxu0 }
 0x13a   : > { %v1821_v7 = vadd.f32 %v1820_v62, %v1807_v3 }
 0x13b   : > { %v1848_v18 = vpop.f32.mrf.mxu2 }
 0x13c   : > { %v1835_v12 = vadd.f32 %v1834_v49, %v1821_v7  ;;  %v1849_v24 = vadd.f32 %v1848_v18, %v556_v23 }
 0x13e   : > { %v1939_v19 = vmax.f32 %v1835_v12, 0.0  ;;  %v1863_v27 = vadd.f32 %v1862_v15, %v1849_v24 }
 0x141   : > { %v1822_v11 = vpop.f32.mrf.mxu3 }
 0x142   : > { %v1823_v13 = vadd.f32 %v1822_v11, %v1809_v9 }
 0x143   : > { %v1850_v26 = vpop.f32.mrf.mxu2 }
 0x144   : > { %v1837_v14 = vadd.f32 %v1836_v1, %v1823_v13  ;;  %v1851_v30 = vadd.f32 %v1850_v26, %v556_v23  ;;  %v2297_v26 = vstv %s3372_s13 }
 0x146   : > { %v1943_v20 = vmax.f32 %v1837_v14, 0.0  ;;  %v1865_v16 = vadd.f32 %v1864_v25, %v1851_v30  ;;  %v2294_v25 = vshrl.u32 %v2293_v22, 7 }
 0x148   : > { %v1947_v21 = vpack.c.bf16 %v1943_v20, %v1939_v19 }
 0x14a   : > { %2245 = vmatmul.bf16.vlgmr.msrb.gmra.mxu2 %v1947_v21 }
 0x14e   : > { %v1876_v55 = vpop.f32.mrf.mxu1 }
 0x14f   : > { %v1877_v29 = vadd.f32 %v1876_v55, %v1863_v27  ;;  %v2295_v27 = vadd.s32 8, %v2294_v25 }
 0x151   : > { %v1918_v32 = vpop.f32.mrf.mxu0  ;;  %v2299_v30 = vadd.s32 %v2297_v26, %v2295_v27 }
 0x153   : > { %vm2301_vm2 = vcmp.lt.s32.totalorder %v2299_v30, 32 }
 0x156   : > { %v1878_v28 = vpop.f32.mrf.mxu1 }
 0x157   : > { %v1879_v60 = vadd.f32 %v1878_v28, %v1865_v16 }
 0x159   : > { %v1890_v54 = vpop.f32.mrf.mxu3  ;;  %v1904_v31 = vpop.f32.mrf.mxu2 }
 0x15a   : > { %v1891_v8 = vadd.f32 %v1890_v54, %v1877_v29  ;;  %v1920_v40 = vpop.f32.mrf.mxu0  ;;  %v2298_v29 = vadd.s32 %v2297_v26, %v2294_v25 }
 0x15c   : > { %v1905_v33 = vadd.f32 %v1904_v31, %v1891_v8  ;;  %vm2300_vm1 = vcmp.lt.s32.totalorder %v2298_v29, 32 }
 0x15e   : > { %v1932_v35 = vpop.f32.mrf.mxu1  ;;  %v1919_v36 = vadd.f32 %v1918_v32, %v1905_v33 }
 0x160   : > { %v1933_v44 = vadd.f32 %v1932_v35, %v1919_v36 }
 0x161   : > { %v1892_v37 = vpop.f32.mrf.mxu3  ;;  %v1906_v38 = vpop.f32.mrf.mxu2 }
 0x162   : > { %v1893_v42 = vadd.f32 %v1892_v37, %v1879_v60  ;;  %v1940_v47 = vmax.f32 %v1933_v44, 0.0 }
 0x164   : > { %v1907_v39 = vadd.f32 %v1906_v38, %v1893_v42 }
 0x166   : > { %v1921_v43 = vadd.f32 %v1920_v40, %v1907_v39  ;;  %v1934_v45 = vpop.f32.mrf.mxu1 }
 0x168   : > { %v1935_v46 = vadd.f32 %v1934_v45, %v1921_v43 }
 0x16a   : > { %v1944_v48 = vmax.f32 %v1935_v46, 0.0 }
 0x16c   : > { %v1948_v49 = vpack.c.bf16 %v1944_v48, %v1940_v47 }
 0x16e   : > { %2259 = vmatmul.bf16.vlgmr.msrb.gmra.mxu0 %v1948_v49 }
 0x179   : > { %v2218_v51 = vpop.f32.mrf.mxu3 }
 0x17a   : > { %v2219_v56 = vadd.f32 %v3629_v50, %v2218_v51 }
 0x181   : > { %v2220_v59 = vpop.f32.mrf.mxu3 }
 0x182   : > { %v2221_v0 = vadd.f32 %v3629_v50, %v2220_v59 }
 0x185   : > { %v2274_v6 = vpop.permute.xlu1 %2273 }
 0x18d   : > { %v2276_v14 = vpop.permute.xlu1 %2275 }
 0x191   : > { %v2232_v52 = vpop.f32.mrf.mxu1 }
 0x192   : > { %v2233_v57 = vadd.f32 %v2232_v52, %v2219_v56 }
 0x199   : > { %v2234_v63 = vpop.f32.mrf.mxu1 }
 0x19a   : > { %v2235_v4 = vadd.f32 %v2234_v63, %v2221_v0 }
 0x1cd   : > { %v2246_v53 = vpop.f32.mrf.mxu2 }
 0x1ce   : > { %v2247_v58 = vadd.f32 %v2246_v53, %v2233_v57 }
 0x1d5   : > { %v2248_v3 = vpop.f32.mrf.mxu2 }
 0x1d6   : > { %v2249_v5 = vadd.f32 %v2248_v3, %v2235_v4 }
 0x1eb   : > { %v2260_v61 = vpop.f32.mrf.mxu0 }
 0x1ec   : > { %v2261_v62 = vadd.f32 %v2260_v61, %v2247_v58 }
 0x1ee   : > { %v2304_v1 = vmul.f32 %v2261_v62, %v2261_v62  ;;  %v2265_v2 = vmul.f32 1.442695, %v2261_v62 }
 0x1f0   : > { %2308 = vrot.lane.b32.xlu0 %v2304_v1, %s3679_s27  ;;  %3630 = vpow2.f32 %v2265_v2 }
 0x1f3   : > { %v2262_v7 = vpop.f32.mrf.mxu0 }
 0x1f4   : > { %v2263_v9 = vadd.f32 %v2262_v7, %v2249_v5 }
 0x1f6   : > { %v3631_v10 = vpop.eup %3630  ;;  %v2305_v11 = vmul.f32 %v2263_v9, %v2263_v9  ;;  %v2267_v12 = vmul.f32 1.442695, %v2263_v9 }
 0x1f7   : > { %v2279_v13 = vmul.f32 %v3631_v10, %v2274_v6  ;;  %v2302_v23 = vmul.f32 %v3631_v10, %v3631_v10 }
 0x1f8   : > { %2310 = vrot.lane.b32.xlu0 %v2305_v11, %s3679_s27  ;;  %3632 = vpow2.f32 %v2267_v12 }
 0x1f9   : > { %2283 = vrot.lane.b32.xlu2 %v2279_v13, %s3680_s8 }
 0x1fe   : > { %v3633_v15 = vpop.eup %3632 }
 0x1ff   : > { %v2280_v17 = vmul.f32 %v3633_v15, %v2276_v14  ;;  %v2303_v54 = vmul.f32 %v3633_v15, %v3633_v15 }
 0x201   : > { %2285 = vrot.lane.b32.xlu2 %v2280_v17, %s3680_s8 }
 0x253   : > { %v2284_v18 = vpop.permute.xlu2 %2283 }
 0x254   : > { %v2289_v19 = vadd.f32 %v2284_v18, %v2261_v62 }
 0x256   : > { %2291 = vst.msk [vmem:[%s328_s12] sm:$0xff] %vm1541_vm0, %v2289_v19 }
 0x25b   : > { %v2286_v20 = vpop.permute.xlu2 %2285 }
 0x25c   : > { %v2290_v21 = vadd.f32 %v2286_v20, %v2263_v9 }
 0x25e   : > { %2292 = vst.msk [vmem:[%s328_s12 + $0x8] sm:$0xff] %vm1541_vm0, %v2290_v21 }
 0x262   : > { %v2309_v55 = vpop.permute.xlu0 %2308 }
 0x263   : > { %v2314_v24 = vadd.f32 %v2309_v55, %v2302_v23 }
 0x265   : > { %v2316_v28 = vsub.f32 %v2314_v24, %v2261_v62 }
 0x267   : > { %v3373_v32 = vadd.f32 -0.5, %v2316_v28 }
 0x269   : > { %v2320_v33 = vsel %vm2300_vm1, %v3373_v32, 0.0 }
 0x26a   : > { %v2311_v31 = vpop.permute.xlu0 %2310  ;;  %v2323_v35 = vsel %vm2322_vm3, %v2320_v33, 0.0 }
 0x26b   : > { %v2315_v8 = vadd.f32 %v2311_v31, %v2303_v54 }
 0x26d   : > { %v2317_v16 = vsub.f32 %v2315_v8, %v2263_v9 }
 0x26f   : > { %v3374_v34 = vadd.f32 -0.5, %v2317_v16 }
 0x271   : > { %v2321_v60 = vsel %vm2301_vm2, %v3374_v34, 0.0 }
 0x272   : > { %v2324_v37 = vsel %vm2322_vm3, %v2321_v60, 0.0 }
 0x273   : > { %v2325_v42 = vadd.f32 %v2324_v37, %v2323_v35 }
 0x275   : > { %v2326_v36 = vrot.slane %v2325_v42, 4 }
 0x277   : > { %v2327_v38 = vadd.f32 %v2326_v36, %v2325_v42 }
 0x279   : > { %v2328_v39 = vrot.slane %v2327_v38, 2 }
 0x27b   : > { %v2329_v40 = vadd.f32 %v2328_v39, %v2327_v38 }
 0x27d   : > { %v2330_v41 = vrot.slane %v2329_v40, 1 }
 0x27f   : > { %v2331_v43 = vadd.f32 %v2330_v41, %v2329_v40 }
 0x281   : > { %2333 = vrot.lane.b32.xlu0 %v2331_v43, %s3680_s8 }
 0x2f3   : > { %v2334_v44 = vpop.permute.xlu0 %2333 }
 0x2f4   : > { %2337 = vst.msk [vmem:[%s332_s15] sm:$0x1] %vm2336_vm4, %v2334_v44 }
 0x2f5 PF: > { %s19_s24 = sadd.s32 1, %s3674_s24  }
 0x2f6   : > { %p16_p8 = scmp.ge.s32.totalorder %s19_s24, 4  }
 0x2f8   :  { %18 = sbr.rel (!%p16_p8) target bundleno = 1 (0x1), region = 94 }
 0x2fd   :  { %2372 = vsyncpa [#allocation3], 1 }
 0x2fe   :  { %2374 = vsyncpa [#allocation3 + $0x1], 1 }

</bundles_post_ra>
